<compile_context>
chip_gen: v7x
topology: tpu7x:2x2x1
jax: 0.10.0
libtpu: 0.0.40
codegen_flags: <defaults>
</compile_context>

<pallas_src>
import math
from functools import partial

import jax
import jax.numpy as jnp
from jax.experimental import pallas as pl
from jax.experimental.pallas import tpu as pltpu


def _layernorm(x, gamma, beta, eps=1e-5):
    mean = jnp.mean(x, axis=-1, keepdims=True)
    var = jnp.mean((x - mean) ** 2, axis=-1, keepdims=True)
    return (x - mean) * jax.lax.rsqrt(var + eps) * gamma + beta


def encoder_layer_kernel(S, D, nhead, TB,
                         x_ref, wqkv_ref, bqkv_ref, wo_ref, bo_ref,
                         w1_ref, b1_ref, w2_ref, b2_ref,
                         g1_ref, be1_ref, g2_ref, be2_ref,
                         out_ref, attn_ref):
    dh = D // nhead
    mm_dtype = wqkv_ref.dtype

    x = x_ref[...].astype(jnp.float32)                       # (TB*S, D)

    # ---- combined in-projection (q-scale already folded into wqkv/bqkv) ----
    qkv = jnp.dot(x.astype(mm_dtype), wqkv_ref[...],
                  preferred_element_type=jnp.float32) + bqkv_ref[...]  # (TB*S, 3D)
    q = qkv[:, 0:D]
    k = qkv[:, D:2 * D]
    v = qkv[:, 2 * D:3 * D]

    # ---- per-head scaled-dot-product attention, batched over the TB batch
    # ---- elements in this block (S x S scores are tiny) --------------------
    for h in range(nhead):                                    # static unroll
        cols = slice(h * dh, (h + 1) * dh)
        qh = q[:, cols].reshape(TB, S, dh)
        kh = k[:, cols].reshape(TB, S, dh)
        vh = v[:, cols].reshape(TB, S, dh)
        s = jnp.einsum("bqd,bkd->bqk", qh, kh,
                       preferred_element_type=jnp.float32)    # (TB, S, S)
        s = s - jnp.max(s, axis=-1, keepdims=True)
        p = jnp.exp(s)
        p = p * pl.reciprocal(jnp.sum(p, axis=-1, keepdims=True),
                              approx=True)
        oh = jnp.einsum("bqk,bkd->bqd", p, vh,
                        preferred_element_type=jnp.float32)   # (TB, S, dh)
        attn_ref[:, cols] = oh.reshape(TB * S, dh)

    attn = attn_ref[...]                                      # (TB*S, D)
    o = jnp.dot(attn.astype(mm_dtype), wo_ref[...],
                preferred_element_type=jnp.float32) + bo_ref[...]

    # TODO(synk): dropout (p=self.dropout) treated as identity (eval mode).
    x1 = _layernorm(x + o, g1_ref[...], be1_ref[...])

    # ---- position-wise feed forward: Linear -> ReLU -> Linear --------------
    h1 = jnp.dot(x1.astype(mm_dtype), w1_ref[...],
                 preferred_element_type=jnp.float32) + b1_ref[...]
    h1 = jnp.maximum(h1, 0.0)
    f = jnp.dot(h1.astype(mm_dtype), w2_ref[...],
                preferred_element_type=jnp.float32) + b2_ref[...]

    x2 = _layernorm(x1 + f, g2_ref[...], be2_ref[...])
    out_ref[...] = x2.astype(out_ref.dtype)


def transformer_encoder_layer(src, params, *, nhead, block_batch=8,
                              matmul_dtype=jnp.bfloat16):
    B, S, D = src.shape
    dh = D // nhead

    # ---- host-side parameter prep (done once, not per grid step) -----------
    q_scale = 1.0 / math.sqrt(dh)
    row_scale = jnp.concatenate(
        [jnp.full((D,), q_scale, jnp.float32),
         jnp.ones((2 * D,), jnp.float32)])
    wqkv_t = (params["wqkv"].astype(jnp.float32) * row_scale[:, None]).T
    wqkv_t = wqkv_t.astype(matmul_dtype)                      # (D, 3D)
    bqkv = params["bqkv"].astype(jnp.float32) * row_scale[None, :]  # (1, 3D)
    wo_t = params["wo"].T.astype(matmul_dtype)                 # (D, D)
    w1_t = params["w1"].T.astype(matmul_dtype)                 # (D, dff)
    w2_t = params["w2"].T.astype(matmul_dtype)                 # (dff, D)
    bo, b1, b2, g1, be1, g2, be2 = [
        params[k].astype(jnp.float32)
        for k in ("bo", "b1", "b2", "g1", "be1", "g2", "be2")]

    # ---- batch blocking: TB batch elements per grid step --------------------
    TB = max(1, min(block_batch, B))
    if (TB * S) % 8 != 0:           # keep the block's second-minor 8-aligned
        TB = B
    B_pad = pl.cdiv(B, TB) * TB
    x = src
    if B_pad != B:
        x = jnp.pad(x, ((0, B_pad - B), (0, 0), (0, 0)))
    x2d = x.reshape(B_pad * S, D)                             # flatten tokens

    ordered = [wqkv_t, bqkv, wo_t, bo, w1_t, b1, w2_t, b2, g1, be1, g2, be2]

    def full_spec(arr):
        nd = arr.ndim
        return pl.BlockSpec(arr.shape, lambda i, _nd=nd: (0,) * _nd)

    in_specs = [pl.BlockSpec((TB * S, D), lambda i: (i, 0))]
    in_specs += [full_spec(a) for a in ordered]

    kernel = partial(encoder_layer_kernel, S, D, nhead, TB)

    out2d = pl.pallas_call(
        kernel,
        out_shape=jax.ShapeDtypeStruct((B_pad * S, D), src.dtype),
        grid=(B_pad // TB,),
        in_specs=in_specs,
        out_specs=pl.BlockSpec((TB * S, D), lambda i: (i, 0)),
        scratch_shapes=[pltpu.VMEM((TB * S, D), jnp.float32)],
        compiler_params=pltpu.CompilerParams(
            dimension_semantics=("parallel",)),
    )(x2d, *ordered)

    return out2d.reshape(B_pad, S, D)[:B]


def reference(src, p, *, nhead):
    """Pure-JAX f32 reference (torch-layout params) for correctness check."""
    B, S, D = src.shape
    dh = D // nhead
    x = src.astype(jnp.float32)
    qkv = jnp.einsum("bsd,ed->bse", x, p["wqkv"]) + p["bqkv"]
    q = qkv[..., 0:D] * (1.0 / math.sqrt(dh))
    k = qkv[..., D:2 * D]
    v = qkv[..., 2 * D:3 * D]
    q = q.reshape(B, S, nhead, dh).transpose(0, 2, 1, 3)
    k = k.reshape(B, S, nhead, dh).transpose(0, 2, 1, 3)
    v = v.reshape(B, S, nhead, dh).transpose(0, 2, 1, 3)
    s = jnp.einsum("bhqd,bhkd->bhqk", q, k)
    a = jax.nn.softmax(s, axis=-1)
    o = jnp.einsum("bhqk,bhkd->bhqd", a, v).transpose(0, 2, 1, 3).reshape(B, S, D)
    o = jnp.einsum("bsd,ed->bse", o, p["wo"]) + p["bo"]
    x1 = _layernorm(x + o, p["g1"], p["be1"])
    h = jax.nn.relu(jnp.einsum("bsd,fd->bsf", x1, p["w1"]) + p["b1"])
    f = jnp.einsum("bsf,df->bsd", h, p["w2"]) + p["b2"]
    return _layernorm(x1 + f, p["g2"], p["be2"])


if __name__ == "__main__":
    B, S, D, nhead, dff = 8, 8, 32, 4, 64

    key = jax.random.PRNGKey(0)
    ks = jax.random.split(key, 8)
    sc = 0.1
    params = {
        "wqkv": jax.random.normal(ks[0], (3 * D, D), jnp.float32) * sc,
        "bqkv": jax.random.normal(ks[1], (1, 3 * D), jnp.float32) * sc,
        "wo":   jax.random.normal(ks[2], (D, D), jnp.float32) * sc,
        "bo":   jax.random.normal(ks[3], (1, D), jnp.float32) * sc,
        "w1":   jax.random.normal(ks[4], (dff, D), jnp.float32) * sc,
        "b1":   jax.random.normal(ks[5], (1, dff), jnp.float32) * sc,
        "w2":   jax.random.normal(ks[6], (D, dff), jnp.float32) * sc,
        "b2":   jax.random.normal(ks[7], (1, D), jnp.float32) * sc,
        "g1":   jnp.ones((1, D), jnp.float32),
        "be1":  jnp.zeros((1, D), jnp.float32),
        "g2":   jnp.ones((1, D), jnp.float32),
        "be2":  jnp.zeros((1, D), jnp.float32),
    }
    src = jax.random.normal(jax.random.PRNGKey(1), (B, S, D), jnp.float32)

    # block_batch=4 -> 2 parallel grid steps (keeps both v7x TensorCores busy).
    out = transformer_encoder_layer(src, params, nhead=nhead, block_batch=4)
    out = jax.block_until_ready(out)

    ref = jax.block_until_ready(reference(src, params, nhead=nhead))
    assert out.shape == (B, S, D)
    # bf16 matmul operands (f32 accumulation / softmax / LayerNorm) -> 2e-2 tol.
    assert jnp.allclose(out, ref, atol=2e-2, rtol=2e-2), "mismatch vs reference"

    print("KERNEL_OK")
</pallas_src>

<mosaic_0001>
module attributes {stable_mosaic.version = 11 : i64} {
  func.func @encoder_layer_kernel(%arg0: i32, %arg1: memref<32x32xf32, #tpu.memory_space<vmem>>, %arg2: memref<32x96xbf16, #tpu.memory_space<vmem>>, %arg3: memref<1x96xf32, #tpu.memory_space<vmem>>, %arg4: memref<32x32xbf16, #tpu.memory_space<vmem>>, %arg5: memref<1x32xf32, #tpu.memory_space<vmem>>, %arg6: memref<32x64xbf16, #tpu.memory_space<vmem>>, %arg7: memref<1x64xf32, #tpu.memory_space<vmem>>, %arg8: memref<64x32xbf16, #tpu.memory_space<vmem>>, %arg9: memref<1x32xf32, #tpu.memory_space<vmem>>, %arg10: memref<1x32xf32, #tpu.memory_space<vmem>>, %arg11: memref<1x32xf32, #tpu.memory_space<vmem>>, %arg12: memref<1x32xf32, #tpu.memory_space<vmem>>, %arg13: memref<1x32xf32, #tpu.memory_space<vmem>>, %arg14: memref<32x32xf32, #tpu.memory_space<vmem>>, %arg15: memref<32x32xf32, #tpu.memory_space<vmem>>) attributes {dimension_semantics = [#tpu.dimension_semantics<parallel>], iteration_bounds = array<i64: 2>, scalar_prefetch = 0 : i64, scratch_operands = 1 : i64, tpu.core_type = #tpu.core_type<tc>, window_params = [{transform_indices = @transform_0, window_bounds = array<i64: 32, 32>}, {pipeline_mode = #tpu.pipeline_mode<synchronous>, transform_indices = @transform_1, window_bounds = array<i64: 32, 96>}, {pipeline_mode = #tpu.pipeline_mode<synchronous>, transform_indices = @transform_2, window_bounds = array<i64: 1, 96>}, {pipeline_mode = #tpu.pipeline_mode<synchronous>, transform_indices = @transform_3, window_bounds = array<i64: 32, 32>}, {pipeline_mode = #tpu.pipeline_mode<synchronous>, transform_indices = @transform_4, window_bounds = array<i64: 1, 32>}, {pipeline_mode = #tpu.pipeline_mode<synchronous>, transform_indices = @transform_5, window_bounds = array<i64: 32, 64>}, {pipeline_mode = #tpu.pipeline_mode<synchronous>, transform_indices = @transform_6, window_bounds = array<i64: 1, 64>}, {pipeline_mode = #tpu.pipeline_mode<synchronous>, transform_indices = @transform_7, window_bounds = array<i64: 64, 32>}, {pipeline_mode = #tpu.pipeline_mode<synchronous>, transform_indices = @transform_8, window_bounds = array<i64: 1, 32>}, {pipeline_mode = #tpu.pipeline_mode<synchronous>, transform_indices = @transform_9, window_bounds = array<i64: 1, 32>}, {pipeline_mode = #tpu.pipeline_mode<synchronous>, transform_indices = @transform_10, window_bounds = array<i64: 1, 32>}, {pipeline_mode = #tpu.pipeline_mode<synchronous>, transform_indices = @transform_11, window_bounds = array<i64: 1, 32>}, {pipeline_mode = #tpu.pipeline_mode<synchronous>, transform_indices = @transform_12, window_bounds = array<i64: 1, 32>}, {transform_indices = @transform_13, window_bounds = array<i64: 32, 32>}]} {
    %c0 = arith.constant 0 : index
    %c0_0 = arith.constant 0 : index
    %0 = vector.load %arg1[%c0, %c0_0] : memref<32x32xf32, #tpu.memory_space<vmem>>, vector<32x32xf32>
    %1 = arith.truncf %0 : vector<32x32xf32> to vector<32x32xbf16>
    %c0_1 = arith.constant 0 : index
    %c0_2 = arith.constant 0 : index
    %2 = vector.load %arg2[%c0_1, %c0_2] : memref<32x96xbf16, #tpu.memory_space<vmem>>, vector<32x96xbf16>
    %cst = arith.constant dense<0.000000e+00> : vector<32x96xf32>
    %3 = tpu.matmul %1, %2, %cst {dimension_numbers = #tpu.dot_dimension_numbers<[1], [0], [0], [1], [0, 0, 1, 1], [], []>} : vector<32x32xbf16>, vector<32x96xbf16>, vector<32x96xf32> -> vector<32x96xf32>
    %c0_3 = arith.constant 0 : index
    %c0_4 = arith.constant 0 : index
    %4 = vector.load %arg3[%c0_3, %c0_4] : memref<1x96xf32, #tpu.memory_space<vmem>>, vector<1x96xf32>
    %5 = vector.broadcast %4 : vector<1x96xf32> to vector<32x96xf32>
    %6 = arith.addf %3, %5 : vector<32x96xf32>
    %7 = vector.extract_strided_slice %6 {offsets = [0, 0], sizes = [32, 32], strides = [1, 1]} : vector<32x96xf32> to vector<32x32xf32>
    %8 = vector.extract_strided_slice %6 {offsets = [0, 32], sizes = [32, 32], strides = [1, 1]} : vector<32x96xf32> to vector<32x32xf32>
    %9 = vector.extract_strided_slice %6 {offsets = [0, 64], sizes = [32, 32], strides = [1, 1]} : vector<32x96xf32> to vector<32x32xf32>
    %10 = vector.extract_strided_slice %7 {offsets = [0, 0], sizes = [32, 8], strides = [1, 1]} : vector<32x32xf32> to vector<32x8xf32>
    %11 = vector.shape_cast %10 : vector<32x8xf32> to vector<4x8x8xf32>
    %12 = vector.extract_strided_slice %8 {offsets = [0, 0], sizes = [32, 8], strides = [1, 1]} : vector<32x32xf32> to vector<32x8xf32>
    %13 = vector.shape_cast %12 : vector<32x8xf32> to vector<4x8x8xf32>
    %14 = vector.extract_strided_slice %9 {offsets = [0, 0], sizes = [32, 8], strides = [1, 1]} : vector<32x32xf32> to vector<32x8xf32>
    %15 = vector.shape_cast %14 : vector<32x8xf32> to vector<4x8x8xf32>
    "tpu.trace_start"() <{level = 10 : i32, message = "bqd,bkd->bqk"}> : () -> ()
    %cst_5 = arith.constant dense<0.000000e+00> : vector<4x8x8xf32>
    %16 = tpu.matmul %11, %13, %cst_5 {dimension_numbers = #tpu.dot_dimension_numbers<[2], [2], [1], [1], [0, 0, 0, 1, 1, 1], [0], [0]>} : vector<4x8x8xf32>, vector<4x8x8xf32>, vector<4x8x8xf32> -> vector<4x8x8xf32>
    "tpu.trace_stop"() : () -> ()
    %cst_6 = arith.constant dense<0xFF800000> : vector<4x8xf32>
    %17 = vector.multi_reduction <maximumf>, %16, %cst_6 [2] : vector<4x8x8xf32> to vector<4x8xf32>
    %18 = vector.shape_cast %17 : vector<4x8xf32> to vector<4x8x1xf32>
    %19 = vector.broadcast %18 : vector<4x8x1xf32> to vector<4x8x8xf32>
    %20 = arith.subf %16, %19 : vector<4x8x8xf32>
    %21 = math.exp %20 : vector<4x8x8xf32>
    %cst_7 = arith.constant dense<0.000000e+00> : vector<4x8xf32>
    %22 = vector.multi_reduction <add>, %21, %cst_7 [2] : vector<4x8x8xf32> to vector<4x8xf32>
    %23 = vector.shape_cast %22 : vector<4x8xf32> to vector<4x8x1xf32>
    %24 = tpu.reciprocal %23 {approx = true} : vector<4x8x1xf32> -> vector<4x8x1xf32>
    %25 = vector.broadcast %24 : vector<4x8x1xf32> to vector<4x8x8xf32>
    %26 = arith.mulf %21, %25 : vector<4x8x8xf32>
    "tpu.trace_start"() <{level = 10 : i32, message = "bqk,bkd->bqd"}> : () -> ()
    %cst_8 = arith.constant dense<0.000000e+00> : vector<4x8x8xf32>
    %27 = tpu.matmul %26, %15, %cst_8 {dimension_numbers = #tpu.dot_dimension_numbers<[2], [1], [1], [2], [0, 0, 0, 1, 1, 2], [0], [0]>} : vector<4x8x8xf32>, vector<4x8x8xf32>, vector<4x8x8xf32> -> vector<4x8x8xf32>
    "tpu.trace_stop"() : () -> ()
    %28 = vector.shape_cast %27 : vector<4x8x8xf32> to vector<32x8xf32>
    %c0_9 = arith.constant 0 : index
    %c0_10 = arith.constant 0 : index
    %29 = vector.load %arg15[%c0_9, %c0_10] : memref<32x32xf32, #tpu.memory_space<vmem>>, vector<32x8xf32>
    tpu.vector_store %arg15[%c0_9, %c0_10], %28 {strides = array<i32>} : memref<32x32xf32, #tpu.memory_space<vmem>>, vector<32x8xf32>,
    %30 = vector.extract_strided_slice %7 {offsets = [0, 8], sizes = [32, 8], strides = [1, 1]} : vector<32x32xf32> to vector<32x8xf32>
    %31 = vector.shape_cast %30 : vector<32x8xf32> to vector<4x8x8xf32>
    %32 = vector.extract_strided_slice %8 {offsets = [0, 8], sizes = [32, 8], strides = [1, 1]} : vector<32x32xf32> to vector<32x8xf32>
    %33 = vector.shape_cast %32 : vector<32x8xf32> to vector<4x8x8xf32>
    %34 = vector.extract_strided_slice %9 {offsets = [0, 8], sizes = [32, 8], strides = [1, 1]} : vector<32x32xf32> to vector<32x8xf32>
    %35 = vector.shape_cast %34 : vector<32x8xf32> to vector<4x8x8xf32>
    "tpu.trace_start"() <{level = 10 : i32, message = "bqd,bkd->bqk"}> : () -> ()
    %cst_11 = arith.constant dense<0.000000e+00> : vector<4x8x8xf32>
    %36 = tpu.matmul %31, %33, %cst_11 {dimension_numbers = #tpu.dot_dimension_numbers<[2], [2], [1], [1], [0, 0, 0, 1, 1, 1], [0], [0]>} : vector<4x8x8xf32>, vector<4x8x8xf32>, vector<4x8x8xf32> -> vector<4x8x8xf32>
    "tpu.trace_stop"() : () -> ()
    %cst_12 = arith.constant dense<0xFF800000> : vector<4x8xf32>
    %37 = vector.multi_reduction <maximumf>, %36, %cst_12 [2] : vector<4x8x8xf32> to vector<4x8xf32>
    %38 = vector.shape_cast %37 : vector<4x8xf32> to vector<4x8x1xf32>
    %39 = vector.broadcast %38 : vector<4x8x1xf32> to vector<4x8x8xf32>
    %40 = arith.subf %36, %39 : vector<4x8x8xf32>
    %41 = math.exp %40 : vector<4x8x8xf32>
    %cst_13 = arith.constant dense<0.000000e+00> : vector<4x8xf32>
    %42 = vector.multi_reduction <add>, %41, %cst_13 [2] : vector<4x8x8xf32> to vector<4x8xf32>
    %43 = vector.shape_cast %42 : vector<4x8xf32> to vector<4x8x1xf32>
    %44 = tpu.reciprocal %43 {approx = true} : vector<4x8x1xf32> -> vector<4x8x1xf32>
    %45 = vector.broadcast %44 : vector<4x8x1xf32> to vector<4x8x8xf32>
    %46 = arith.mulf %41, %45 : vector<4x8x8xf32>
    "tpu.trace_start"() <{level = 10 : i32, message = "bqk,bkd->bqd"}> : () -> ()
    %cst_14 = arith.constant dense<0.000000e+00> : vector<4x8x8xf32>
    %47 = tpu.matmul %46, %35, %cst_14 {dimension_numbers = #tpu.dot_dimension_numbers<[2], [1], [1], [2], [0, 0, 0, 1, 1, 2], [0], [0]>} : vector<4x8x8xf32>, vector<4x8x8xf32>, vector<4x8x8xf32> -> vector<4x8x8xf32>
    "tpu.trace_stop"() : () -> ()
    %48 = vector.shape_cast %47 : vector<4x8x8xf32> to vector<32x8xf32>
    %c0_15 = arith.constant 0 : index
    %c8 = arith.constant 8 : index
    %49 = vector.load %arg15[%c0_15, %c8] : memref<32x32xf32, #tpu.memory_space<vmem>>, vector<32x8xf32>
    tpu.vector_store %arg15[%c0_15, %c8], %48 {strides = array<i32>} : memref<32x32xf32, #tpu.memory_space<vmem>>, vector<32x8xf32>,
    %50 = vector.extract_strided_slice %7 {offsets = [0, 16], sizes = [32, 8], strides = [1, 1]} : vector<32x32xf32> to vector<32x8xf32>
    %51 = vector.shape_cast %50 : vector<32x8xf32> to vector<4x8x8xf32>
    %52 = vector.extract_strided_slice %8 {offsets = [0, 16], sizes = [32, 8], strides = [1, 1]} : vector<32x32xf32> to vector<32x8xf32>
    %53 = vector.shape_cast %52 : vector<32x8xf32> to vector<4x8x8xf32>
    %54 = vector.extract_strided_slice %9 {offsets = [0, 16], sizes = [32, 8], strides = [1, 1]} : vector<32x32xf32> to vector<32x8xf32>
    %55 = vector.shape_cast %54 : vector<32x8xf32> to vector<4x8x8xf32>
    "tpu.trace_start"() <{level = 10 : i32, message = "bqd,bkd->bqk"}> : () -> ()
    %cst_16 = arith.constant dense<0.000000e+00> : vector<4x8x8xf32>
    %56 = tpu.matmul %51, %53, %cst_16 {dimension_numbers = #tpu.dot_dimension_numbers<[2], [2], [1], [1], [0, 0, 0, 1, 1, 1], [0], [0]>} : vector<4x8x8xf32>, vector<4x8x8xf32>, vector<4x8x8xf32> -> vector<4x8x8xf32>
    "tpu.trace_stop"() : () -> ()
    %cst_17 = arith.constant dense<0xFF800000> : vector<4x8xf32>
    %57 = vector.multi_reduction <maximumf>, %56, %cst_17 [2] : vector<4x8x8xf32> to vector<4x8xf32>
    %58 = vector.shape_cast %57 : vector<4x8xf32> to vector<4x8x1xf32>
    %59 = vector.broadcast %58 : vector<4x8x1xf32> to vector<4x8x8xf32>
    %60 = arith.subf %56, %59 : vector<4x8x8xf32>
    %61 = math.exp %60 : vector<4x8x8xf32>
    %cst_18 = arith.constant dense<0.000000e+00> : vector<4x8xf32>
    %62 = vector.multi_reduction <add>, %61, %cst_18 [2] : vector<4x8x8xf32> to vector<4x8xf32>
    %63 = vector.shape_cast %62 : vector<4x8xf32> to vector<4x8x1xf32>
    %64 = tpu.reciprocal %63 {approx = true} : vector<4x8x1xf32> -> vector<4x8x1xf32>
    %65 = vector.broadcast %64 : vector<4x8x1xf32> to vector<4x8x8xf32>
    %66 = arith.mulf %61, %65 : vector<4x8x8xf32>
    "tpu.trace_start"() <{level = 10 : i32, message = "bqk,bkd->bqd"}> : () -> ()
    %cst_19 = arith.constant dense<0.000000e+00> : vector<4x8x8xf32>
    %67 = tpu.matmul %66, %55, %cst_19 {dimension_numbers = #tpu.dot_dimension_numbers<[2], [1], [1], [2], [0, 0, 0, 1, 1, 2], [0], [0]>} : vector<4x8x8xf32>, vector<4x8x8xf32>, vector<4x8x8xf32> -> vector<4x8x8xf32>
    "tpu.trace_stop"() : () -> ()
    %68 = vector.shape_cast %67 : vector<4x8x8xf32> to vector<32x8xf32>
    %c0_20 = arith.constant 0 : index
    %c16 = arith.constant 16 : index
    %69 = vector.load %arg15[%c0_20, %c16] : memref<32x32xf32, #tpu.memory_space<vmem>>, vector<32x8xf32>
    tpu.vector_store %arg15[%c0_20, %c16], %68 {strides = array<i32>} : memref<32x32xf32, #tpu.memory_space<vmem>>, vector<32x8xf32>,
    %70 = vector.extract_strided_slice %7 {offsets = [0, 24], sizes = [32, 8], strides = [1, 1]} : vector<32x32xf32> to vector<32x8xf32>
    %71 = vector.shape_cast %70 : vector<32x8xf32> to vector<4x8x8xf32>
    %72 = vector.extract_strided_slice %8 {offsets = [0, 24], sizes = [32, 8], strides = [1, 1]} : vector<32x32xf32> to vector<32x8xf32>
    %73 = vector.shape_cast %72 : vector<32x8xf32> to vector<4x8x8xf32>
    %74 = vector.extract_strided_slice %9 {offsets = [0, 24], sizes = [32, 8], strides = [1, 1]} : vector<32x32xf32> to vector<32x8xf32>
    %75 = vector.shape_cast %74 : vector<32x8xf32> to vector<4x8x8xf32>
    "tpu.trace_start"() <{level = 10 : i32, message = "bqd,bkd->bqk"}> : () -> ()
    %cst_21 = arith.constant dense<0.000000e+00> : vector<4x8x8xf32>
    %76 = tpu.matmul %71, %73, %cst_21 {dimension_numbers = #tpu.dot_dimension_numbers<[2], [2], [1], [1], [0, 0, 0, 1, 1, 1], [0], [0]>} : vector<4x8x8xf32>, vector<4x8x8xf32>, vector<4x8x8xf32> -> vector<4x8x8xf32>
    "tpu.trace_stop"() : () -> ()
    %cst_22 = arith.constant dense<0xFF800000> : vector<4x8xf32>
    %77 = vector.multi_reduction <maximumf>, %76, %cst_22 [2] : vector<4x8x8xf32> to vector<4x8xf32>
    %78 = vector.shape_cast %77 : vector<4x8xf32> to vector<4x8x1xf32>
    %79 = vector.broadcast %78 : vector<4x8x1xf32> to vector<4x8x8xf32>
    %80 = arith.subf %76, %79 : vector<4x8x8xf32>
    %81 = math.exp %80 : vector<4x8x8xf32>
    %cst_23 = arith.constant dense<0.000000e+00> : vector<4x8xf32>
    %82 = vector.multi_reduction <add>, %81, %cst_23 [2] : vector<4x8x8xf32> to vector<4x8xf32>
    %83 = vector.shape_cast %82 : vector<4x8xf32> to vector<4x8x1xf32>
    %84 = tpu.reciprocal %83 {approx = true} : vector<4x8x1xf32> -> vector<4x8x1xf32>
    %85 = vector.broadcast %84 : vector<4x8x1xf32> to vector<4x8x8xf32>
    %86 = arith.mulf %81, %85 : vector<4x8x8xf32>
    "tpu.trace_start"() <{level = 10 : i32, message = "bqk,bkd->bqd"}> : () -> ()
    %cst_24 = arith.constant dense<0.000000e+00> : vector<4x8x8xf32>
    %87 = tpu.matmul %86, %75, %cst_24 {dimension_numbers = #tpu.dot_dimension_numbers<[2], [1], [1], [2], [0, 0, 0, 1, 1, 2], [0], [0]>} : vector<4x8x8xf32>, vector<4x8x8xf32>, vector<4x8x8xf32> -> vector<4x8x8xf32>
    "tpu.trace_stop"() : () -> ()
    %88 = vector.shape_cast %87 : vector<4x8x8xf32> to vector<32x8xf32>
    %c0_25 = arith.constant 0 : index
    %c24 = arith.constant 24 : index
    %89 = vector.load %arg15[%c0_25, %c24] : memref<32x32xf32, #tpu.memory_space<vmem>>, vector<32x8xf32>
    tpu.vector_store %arg15[%c0_25, %c24], %88 {strides = array<i32>} : memref<32x32xf32, #tpu.memory_space<vmem>>, vector<32x8xf32>,
    %c0_26 = arith.constant 0 : index
    %c0_27 = arith.constant 0 : index
    %90 = vector.load %arg15[%c0_26, %c0_27] : memref<32x32xf32, #tpu.memory_space<vmem>>, vector<32x32xf32>
    %91 = arith.truncf %90 : vector<32x32xf32> to vector<32x32xbf16>
    %c0_28 = arith.constant 0 : index
    %c0_29 = arith.constant 0 : index
    %92 = vector.load %arg4[%c0_28, %c0_29] : memref<32x32xbf16, #tpu.memory_space<vmem>>, vector<32x32xbf16>
    %cst_30 = arith.constant dense<0.000000e+00> : vector<32x32xf32>
    %93 = tpu.matmul %91, %92, %cst_30 {dimension_numbers = #tpu.dot_dimension_numbers<[1], [0], [0], [1], [0, 0, 1, 1], [], []>} : vector<32x32xbf16>, vector<32x32xbf16>, vector<32x32xf32> -> vector<32x32xf32>
    %c0_31 = arith.constant 0 : index
    %c0_32 = arith.constant 0 : index
    %94 = vector.load %arg5[%c0_31, %c0_32] : memref<1x32xf32, #tpu.memory_space<vmem>>, vector<1x32xf32>
    %95 = vector.broadcast %94 : vector<1x32xf32> to vector<32x32xf32>
    %96 = arith.addf %93, %95 : vector<32x32xf32>
    %97 = arith.addf %0, %96 : vector<32x32xf32>
    %c0_33 = arith.constant 0 : index
    %c0_34 = arith.constant 0 : index
    %98 = vector.load %arg10[%c0_33, %c0_34] : memref<1x32xf32, #tpu.memory_space<vmem>>, vector<1x32xf32>
    %c0_35 = arith.constant 0 : index
    %c0_36 = arith.constant 0 : index
    %99 = vector.load %arg11[%c0_35, %c0_36] : memref<1x32xf32, #tpu.memory_space<vmem>>, vector<1x32xf32>
    %cst_37 = arith.constant dense<0.000000e+00> : vector<32xf32>
    %100 = vector.multi_reduction <add>, %97, %cst_37 [1] : vector<32x32xf32> to vector<32xf32>
    %101 = vector.shape_cast %100 : vector<32xf32> to vector<32x1xf32>
    %cst_38 = arith.constant 3.200000e+01 : f32
    %102 = vector.broadcast %cst_38 : f32 to vector<32x1xf32>
    %103 = arith.divf %101, %102 : vector<32x1xf32>
    %104 = vector.broadcast %103 : vector<32x1xf32> to vector<32x32xf32>
    %105 = arith.subf %97, %104 : vector<32x32xf32>
    %106 = arith.mulf %105, %105 : vector<32x32xf32>
    %cst_39 = arith.constant dense<0.000000e+00> : vector<32xf32>
    %107 = vector.multi_reduction <add>, %106, %cst_39 [1] : vector<32x32xf32> to vector<32xf32>
    %108 = vector.shape_cast %107 : vector<32xf32> to vector<32x1xf32>
    %cst_40 = arith.constant 3.200000e+01 : f32
    %109 = vector.broadcast %cst_40 : f32 to vector<32x1xf32>
    %110 = arith.divf %108, %109 : vector<32x1xf32>
    %111 = vector.broadcast %103 : vector<32x1xf32> to vector<32x32xf32>
    %112 = arith.subf %97, %111 : vector<32x32xf32>
    %cst_41 = arith.constant 9.99999974E-6 : f32
    %113 = vector.broadcast %cst_41 : f32 to vector<32x1xf32>
    %114 = arith.addf %110, %113 : vector<32x1xf32>
    %115 = math.rsqrt %114 : vector<32x1xf32>
    %116 = vector.broadcast %115 : vector<32x1xf32> to vector<32x32xf32>
    %117 = arith.mulf %112, %116 : vector<32x32xf32>
    %118 = vector.broadcast %98 : vector<1x32xf32> to vector<32x32xf32>
    %119 = arith.mulf %117, %118 : vector<32x32xf32>
    %120 = vector.broadcast %99 : vector<1x32xf32> to vector<32x32xf32>
    %121 = arith.addf %119, %120 : vector<32x32xf32>
    %122 = arith.truncf %121 : vector<32x32xf32> to vector<32x32xbf16>
    %c0_42 = arith.constant 0 : index
    %c0_43 = arith.constant 0 : index
    %123 = vector.load %arg6[%c0_42, %c0_43] : memref<32x64xbf16, #tpu.memory_space<vmem>>, vector<32x64xbf16>
    %cst_44 = arith.constant dense<0.000000e+00> : vector<32x64xf32>
    %124 = tpu.matmul %122, %123, %cst_44 {dimension_numbers = #tpu.dot_dimension_numbers<[1], [0], [0], [1], [0, 0, 1, 1], [], []>} : vector<32x32xbf16>, vector<32x64xbf16>, vector<32x64xf32> -> vector<32x64xf32>
    %c0_45 = arith.constant 0 : index
    %c0_46 = arith.constant 0 : index
    %125 = vector.load %arg7[%c0_45, %c0_46] : memref<1x64xf32, #tpu.memory_space<vmem>>, vector<1x64xf32>
    %126 = vector.broadcast %125 : vector<1x64xf32> to vector<32x64xf32>
    %127 = arith.addf %124, %126 : vector<32x64xf32>
    %cst_47 = arith.constant 0.000000e+00 : f32
    %128 = vector.broadcast %cst_47 : f32 to vector<32x64xf32>
    %129 = arith.maximumf %127, %128 : vector<32x64xf32>
    %130 = arith.truncf %129 : vector<32x64xf32> to vector<32x64xbf16>
    %c0_48 = arith.constant 0 : index
    %c0_49 = arith.constant 0 : index
    %131 = vector.load %arg8[%c0_48, %c0_49] : memref<64x32xbf16, #tpu.memory_space<vmem>>, vector<64x32xbf16>
    %cst_50 = arith.constant dense<0.000000e+00> : vector<32x32xf32>
    %132 = tpu.matmul %130, %131, %cst_50 {dimension_numbers = #tpu.dot_dimension_numbers<[1], [0], [0], [1], [0, 0, 1, 1], [], []>} : vector<32x64xbf16>, vector<64x32xbf16>, vector<32x32xf32> -> vector<32x32xf32>
    %c0_51 = arith.constant 0 : index
    %c0_52 = arith.constant 0 : index
    %133 = vector.load %arg9[%c0_51, %c0_52] : memref<1x32xf32, #tpu.memory_space<vmem>>, vector<1x32xf32>
    %134 = vector.broadcast %133 : vector<1x32xf32> to vector<32x32xf32>
    %135 = arith.addf %132, %134 : vector<32x32xf32>
    %136 = arith.addf %121, %135 : vector<32x32xf32>
    %c0_53 = arith.constant 0 : index
    %c0_54 = arith.constant 0 : index
    %137 = vector.load %arg12[%c0_53, %c0_54] : memref<1x32xf32, #tpu.memory_space<vmem>>, vector<1x32xf32>
    %c0_55 = arith.constant 0 : index
    %c0_56 = arith.constant 0 : index
    %138 = vector.load %arg13[%c0_55, %c0_56] : memref<1x32xf32, #tpu.memory_space<vmem>>, vector<1x32xf32>
    %cst_57 = arith.constant dense<0.000000e+00> : vector<32xf32>
    %139 = vector.multi_reduction <add>, %136, %cst_57 [1] : vector<32x32xf32> to vector<32xf32>
    %140 = vector.shape_cast %139 : vector<32xf32> to vector<32x1xf32>
    %cst_58 = arith.constant 3.200000e+01 : f32
    %141 = vector.broadcast %cst_58 : f32 to vector<32x1xf32>
    %142 = arith.divf %140, %141 : vector<32x1xf32>
    %143 = vector.broadcast %142 : vector<32x1xf32> to vector<32x32xf32>
    %144 = arith.subf %136, %143 : vector<32x32xf32>
    %145 = arith.mulf %144, %144 : vector<32x32xf32>
    %cst_59 = arith.constant dense<0.000000e+00> : vector<32xf32>
    %146 = vector.multi_reduction <add>, %145, %cst_59 [1] : vector<32x32xf32> to vector<32xf32>
    %147 = vector.shape_cast %146 : vector<32xf32> to vector<32x1xf32>
    %cst_60 = arith.constant 3.200000e+01 : f32
    %148 = vector.broadcast %cst_60 : f32 to vector<32x1xf32>
    %149 = arith.divf %147, %148 : vector<32x1xf32>
    %150 = vector.broadcast %142 : vector<32x1xf32> to vector<32x32xf32>
    %151 = arith.subf %136, %150 : vector<32x32xf32>
    %cst_61 = arith.constant 9.99999974E-6 : f32
    %152 = vector.broadcast %cst_61 : f32 to vector<32x1xf32>
    %153 = arith.addf %149, %152 : vector<32x1xf32>
    %154 = math.rsqrt %153 : vector<32x1xf32>
    %155 = vector.broadcast %154 : vector<32x1xf32> to vector<32x32xf32>
    %156 = arith.mulf %151, %155 : vector<32x32xf32>
    %157 = vector.broadcast %137 : vector<1x32xf32> to vector<32x32xf32>
    %158 = arith.mulf %156, %157 : vector<32x32xf32>
    %159 = vector.broadcast %138 : vector<1x32xf32> to vector<32x32xf32>
    %160 = arith.addf %158, %159 : vector<32x32xf32>
    %c0_62 = arith.constant 0 : index
    %c0_63 = arith.constant 0 : index
    %161 = vector.load %arg14[%c0_62, %c0_63] : memref<32x32xf32, #tpu.memory_space<vmem>>, vector<32x32xf32>
    tpu.vector_store %arg14[%c0_62, %c0_63], %160 {strides = array<i32>} : memref<32x32xf32, #tpu.memory_space<vmem>>, vector<32x32xf32>,
    return
  }
  func.func @transform_0(%arg0: i32) -> (i32, i32) {
    %c0_i32 = arith.constant 0 : i32
    %c0_i32_0 = arith.constant 0 : i32
    return %arg0, %c0_i32 : i32, i32
  }
  func.func @transform_1(%arg0: i32) -> (i32, i32) {
    %c0_i32 = arith.constant 0 : i32
    %c0_i32_0 = arith.constant 0 : i32
    %c0_i32_1 = arith.constant 0 : i32
    return %c0_i32, %c0_i32_0 : i32, i32
  }
  func.func @transform_2(%arg0: i32) -> (i32, i32) {
    %c0_i32 = arith.constant 0 : i32
    %c0_i32_0 = arith.constant 0 : i32
    %c0_i32_1 = arith.constant 0 : i32
    return %c0_i32, %c0_i32_0 : i32, i32
  }
  func.func @transform_3(%arg0: i32) -> (i32, i32) {
    %c0_i32 = arith.constant 0 : i32
    %c0_i32_0 = arith.constant 0 : i32
    %c0_i32_1 = arith.constant 0 : i32
    return %c0_i32, %c0_i32_0 : i32, i32
  }
  func.func @transform_4(%arg0: i32) -> (i32, i32) {
    %c0_i32 = arith.constant 0 : i32
    %c0_i32_0 = arith.constant 0 : i32
    %c0_i32_1 = arith.constant 0 : i32
    return %c0_i32, %c0_i32_0 : i32, i32
  }
  func.func @transform_5(%arg0: i32) -> (i32, i32) {
    %c0_i32 = arith.constant 0 : i32
    %c0_i32_0 = arith.constant 0 : i32
    %c0_i32_1 = arith.constant 0 : i32
    return %c0_i32, %c0_i32_0 : i32, i32
  }
  func.func @transform_6(%arg0: i32) -> (i32, i32) {
    %c0_i32 = arith.constant 0 : i32
    %c0_i32_0 = arith.constant 0 : i32
    %c0_i32_1 = arith.constant 0 : i32
    return %c0_i32, %c0_i32_0 : i32, i32
  }
  func.func @transform_7(%arg0: i32) -> (i32, i32) {
    %c0_i32 = arith.constant 0 : i32
    %c0_i32_0 = arith.constant 0 : i32
    %c0_i32_1 = arith.constant 0 : i32
    return %c0_i32, %c0_i32_0 : i32, i32
  }
  func.func @transform_8(%arg0: i32) -> (i32, i32) {
    %c0_i32 = arith.constant 0 : i32
    %c0_i32_0 = arith.constant 0 : i32
    %c0_i32_1 = arith.constant 0 : i32
    return %c0_i32, %c0_i32_0 : i32, i32
  }
  func.func @transform_9(%arg0: i32) -> (i32, i32) {
    %c0_i32 = arith.constant 0 : i32
    %c0_i32_0 = arith.constant 0 : i32
    %c0_i32_1 = arith.constant 0 : i32
    return %c0_i32, %c0_i32_0 : i32, i32
  }
  func.func @transform_10(%arg0: i32) -> (i32, i32) {
    %c0_i32 = arith.constant 0 : i32
    %c0_i32_0 = arith.constant 0 : i32
    %c0_i32_1 = arith.constant 0 : i32
    return %c0_i32, %c0_i32_0 : i32, i32
  }
  func.func @transform_11(%arg0: i32) -> (i32, i32) {
    %c0_i32 = arith.constant 0 : i32
    %c0_i32_0 = arith.constant 0 : i32
    %c0_i32_1 = arith.constant 0 : i32
    return %c0_i32, %c0_i32_0 : i32, i32
  }
  func.func @transform_12(%arg0: i32) -> (i32, i32) {
    %c0_i32 = arith.constant 0 : i32
    %c0_i32_0 = arith.constant 0 : i32
    %c0_i32_1 = arith.constant 0 : i32
    return %c0_i32, %c0_i32_0 : i32, i32
  }
  func.func @transform_13(%arg0: i32) -> (i32, i32) {
    %c0_i32 = arith.constant 0 : i32
    %c0_i32_0 = arith.constant 0 : i32
    return %arg0, %c0_i32 : i32, i32
  }
}

</mosaic_0001>

<bundles_post_ra>
// kernel: tpu_custom_call.1
= control target key start
LH: loop header
LB: loop body
LE: loop exit
PB: predicated region body
PF: predicated region fallthrough
CT: control target
= control target key end

     0   :  { %s4291_s25 = smov 0   ;;  %s4679_s0 = inlined_call_operand.vmem [shape: f32[64,32], index: 0, kind: input, shape index: {}]   ;;  %s4680_s1 = inlined_call_operand.vmem [shape: bf16[32,96], index: 1, kind: input, shape index: {}]   ;;  %s4681_s2 = inlined_call_operand.vmem [shape: f32[1,96], index: 2, kind: input, shape index: {}]   ;;  %s4682_s3 = inlined_call_operand.vmem [shape: bf16[32,32], index: 3, kind: input, shape index: {}]   ;;  %s4683_s4 = inlined_call_operand.vmem [shape: f32[1,32], index: 4, kind: input, shape index: {}]   ;;  %s4684_s5 = inlined_call_operand.vmem [shape: bf16[32,64], index: 5, kind: input, shape index: {}]   ;;  %s4685_s6 = inlined_call_operand.vmem [shape: f32[1,64], index: 6, kind: input, shape index: {}]   ;;  %s4686_s7 = inlined_call_operand.vmem [shape: bf16[64,32], index: 7, kind: input, shape index: {}]   ;;  %s4687_s8 = inlined_call_operand.vmem [shape: f32[1,32], index: 8, kind: input, shape index: {}]   ;;  %s4688_s9 = inlined_call_operand.vmem [shape: f32[1,32], index: 9, kind: input, shape index: {}]   ;;  %s4689_s10 = inlined_call_operand.vmem [shape: f32[1,32], index: 10, kind: input, shape index: {}]   ;;  %s4690_s11 = inlined_call_operand.vmem [shape: f32[1,32], index: 11, kind: input, shape index: {}]   ;;  %s4691_s12 = inlined_call_operand.vmem [shape: f32[1,32], index: 12, kind: input, shape index: {}]   ;;  %s4692_s13 = inlined_call_operand.vmem [shape: f32[64,32], index: 13, kind: output, shape index: {}]  }
   0x1 LB: > { %s3716_s26 = sadd.s32 4294967295, %s4203_s25   ;;  %p3720_p0 = scmp.ge.s32.totalorder %s4203_s25, 1  ;;  %s4203_s25 = sphi %s4291_s25, %s23_s25  }
   0x2   : > { %p388_p1 = scmp.lt.s32.totalorder %s4203_s25, 3 }
   0x4   : > { %p389_p2 = pnand %p3720_p0, %p388_p1 }
   0x5   : > { %v4103_v0 = vld [vmem:[%s4680_s1] sm:$0xff] (!%p389_p2)   ;;  %s3721_s29 = sshll.u32 (!%p389_p2), %s3716_s26, 2  ;;  %v4104_v1 = vld [vmem:[%s4680_s1 + $0x8] sm:$0xff] (!%p389_p2)   ;;  %vm474_vm0 = vcmask (!%p389_p2), 261120   ;;  %v4205_v8 = vmov (!%p389_p2), 0.0   ;;  %vm4206_vm1 = vmmov (!%p389_p2), 0  }
   0x6   : > { %392 = sbr.rel (%p389_p2) target bundleno = 4226 (0x1082), region = 72  ;;  %p433_p3 = scmp.lt.s32.totalorder (!%p389_p2), %s3721_s29, 7  ;;  %3883 = vmatprep.subr.bf16.mxu0 (!%p389_p2), %v4103_v0  ;;  %3896 = vmatprep.subr.mxu1 (!%p389_p2), %v4205_v8  ;;  %v3725_v9 = vld [vmem:[%s4681_s2] ss:$0 sm:$0xff] (!%p389_p2)  ;;  %vm533_vm2 = vcmask (!%p389_p2), 64512   ;;  %vm1867_vm3 = vcmask (!%p389_p2), 130112  }
   0x7   : > { %3884 = vmatpush3.bf16.msra.mxu0 (!%p389_p2), %v4103_v0  ;;  %3898 = vmatprep.mubr.msk.f32.mxu1 (!%p389_p2), %vm4206_vm1, %v4205_v8  ;;  %s4207_s21 = smov (!%p389_p2), 96   ;;  %s4208_s22 = smov (!%p389_p2), 64   ;;  %vm2548_vm4 = vcmask (!%p389_p2), 195712   ;;  %vm3229_vm5 = vcmask (!%p389_p2), 261312   ;;  %vm3522_vm6 = vcmask (!%p389_p2), 523264  }
   0x8   : > { %3885 = vmatprep.subr.bf16.mxu0 (!%p389_p2), %v4104_v1  ;;  %s4209_s23 = smov (!%p389_p2), 88   ;;  %s4210_s24 = smov (!%p389_p2), 120  }
   0x9   : > { %s4211_s26 = smov (!%p389_p2), 56   ;;  %s4212_s27 = smov (!%p389_p2), 80  }
   0xa   : > { %s4213_s28 = smov (!%p389_p2), 112   ;;  %s4214_s30 = smov (!%p389_p2), 48  }
   0xb   : > { %3886 = vmatpush3.bf16.msra.mxu0 (!%p389_p2), %v4104_v1  ;;  %s4215_s14 = smov (!%p389_p2), 72   ;;  %s4216_s16 = smov (!%p389_p2), 104  }
   0xc   : > { %3891 = vmatprep.subr.mxu0 (!%p389_p2), %v4205_v8  ;;  %s4217_s17 = smov (!%p389_p2), 40   ;;  %s4218_s19 = smov (!%p389_p2), 8  }
   0xd   : > { %s4694_s29 = smov (!%p433_p3, %s3721_s29), 7  ;;  %s4219_s20 = smov 16  }
   0xe   : > { %s3722_s15 = sshll.u32 %s4694_s29, 3 }
   0xf   : > { %s4313_s18 = scalar_lea.vmem %s4679_s0, %s3722_s15 }
  0x10   : > { %v445_v2 = vld [vmem:[%s4313_s18] sm:$0xff]  ;;  %v446_v3 = vld [vmem:[%s4313_s18 + $0x8] sm:$0xff]  ;;  %v447_v4 = vld [vmem:[%s4313_s18 + $0x10] sm:$0xff] }
  0x11   : > { %v449_v5 = vpack.c.bf16 %v446_v3, %v445_v2  ;;  %v448_v6 = vld [vmem:[%s4313_s18 + $0x18] sm:$0xff] }
  0x12   : > { %v450_v7 = vpack.c.bf16 %v448_v6, %v447_v4 }
  0x13   : > { %3887 = vmatprep.mubr.msk.bf16.mxu0 %vm474_vm0, %v449_v5 }
  0x14   : > { %3888 = vmatmul.mubr.msk.bf16.vlgmr.msra.gmra.mrb[0].mxu0 %vm474_vm0, %v450_v7 }
  0x15   : > { %3893 = vmatprep.mubr.msk.f32.mxu0 %vm4206_vm1, %v4205_v8 }
  0xe7   : > { %v3889_v10 = vpop.f32.mrb[0].mxu0 }
  0xe8   : > { %v4330_v11 = vadd.f32 %v3889_v10, %v3725_v9  ;;  %v515_v12 = vpop.f32.mrb[1].mxu0 }
  0xe9   : > { %v4332_v13 = vadd.f32 %v3725_v9, %v515_v12  ;;  %v3890_v14 = vpop.f32.mrb[2].mxu0 }
  0xea   : > { %686 = vrot.lane.b32.xlu1 %v4330_v11, %s4207_s21  ;;  %v518_v15 = vpop.f32.mrb[3].mxu0  ;;  %v4336_v16 = vadd.f32 %v3890_v14, %v3725_v9 }
  0xeb   : > { %531 = vrot.lane.b32.xlu0 %v4332_v13, %s4207_s21  ;;  %v4338_v17 = vadd.f32 %v3725_v9, %v518_v15 }
  0xee   : > { %763 = vrot.lane.b32.xlu1 %v4336_v16, %s4207_s21 }
  0xef   : > { %609 = vrot.lane.b32.xlu0 %v4338_v17, %s4207_s21 }
 0x15c   : > { %v687_v18 = vpop.permute.xlu1 %686 }
 0x15d   : > { %v532_v19 = vpop.permute.xlu0 %531 }
 0x15e   : > { %3892 = vmatpush3.xpose.msk.msra.mxu0 %vm533_vm2, %v532_v19 }
 0x15f   : > { %3906 = vmatprep.subr.mxu0 %v4205_v8 }
 0x160   : > { %v764_v20 = vpop.permute.xlu1 %763 }
 0x161   : > { %3894 = vmatmul.mubr.msk.f32.vlgmr.msra.gmra.mrb[4].mxu0 %vm533_vm2, %v4332_v13  ;;  %v610_v21 = vpop.permute.xlu0 %609 }
 0x162   : > { %3897 = vmatpush3.xpose.msk.msra.mxu1 %vm533_vm2, %v610_v21  ;;  %3907 = vmatpush3.xpose.msk.msra.mxu0 %vm533_vm2, %v764_v20 }
 0x163   : > { %3908 = vmatprep.mubr.msk.f32.mxu0 %vm4206_vm1, %v4205_v8  ;;  %3901 = vmatprep.subr.mxu1 %v4205_v8 }
 0x164   : > { %3916 = vmatprep.subr.mxu0 %v4205_v8 }
 0x165   : > { %3899 = vmatmul.mubr.msk.f32.vlgmr.msra.gmra.mrb[0].mxu1 %vm533_vm2, %v4338_v17  ;;  %3909 = vmatmul.mubr.msk.f32.vlgmr.msra.gmra.mrb[6].mxu0 %vm533_vm2, %v4336_v16 }
 0x166   : > { %3902 = vmatpush3.xpose.msk.msra.mxu1 %vm533_vm2, %v687_v18  ;;  %3903 = vmatprep.mubr.msk.f32.mxu1 %vm4206_vm1, %v4205_v8 }
 0x167   : > { %3911 = vmatprep.subr.mxu1 %v4205_v8  ;;  %3918 = vmatprep.mubr.msk.f32.mxu0 %vm4206_vm1, %v4205_v8 }
 0x169   : > { %3904 = vmatmul.mubr.msk.f32.vlgmr.msra.gmra.mrb[2].mxu1 %vm533_vm2, %v4330_v11 }
 0x16a   : > { %3913 = vmatprep.mubr.msk.f32.mxu1 %vm4206_vm1, %v4205_v8 }
 0x234   : > { %v604_v22 = vpop.f32.mrb[4].mxu0 }
 0x235   : > { %v3895_v23 = vpop.f32.mrb[5].mxu0  ;;  %v839_v24 = vsel %vm533_vm2, %v604_v22, -inf }
 0x236   : > { %840 = vmax.xlane.f32.xlu0 %v839_v24 }
 0x238   : > { %v681_v25 = vpop.f32.mrb[0].mxu1  ;;  %v835_v26 = vpop.f32.mrb[6].mxu0 }
 0x239   : > { %v3900_v27 = vpop.f32.mrb[1].mxu1  ;;  %v3910_v28 = vpop.f32.mrb[7].mxu0  ;;  %v842_v29 = vsel %vm533_vm2, %v681_v25, -inf  ;;  %v848_v33 = vsel %vm533_vm2, %v835_v26, -inf }
 0x23a   : > { %843 = vmax.xlane.f32.xlu1 %v842_v29 }
 0x23c   : > { %v758_v30 = vpop.f32.mrb[2].mxu1 }
 0x23d   : > { %v3905_v31 = vpop.f32.mrb[3].mxu1  ;;  %v845_v32 = vsel %vm533_vm2, %v758_v30, -inf }
 0x23e   : > { %846 = vmax.xlane.f32.xlu0 %v845_v32 }
 0x242   : > { %849 = vmax.xlane.f32.xlu0 %v848_v33 }
 0x24b   : > { %883 = vrot.lane.b32.xlu1 %v4332_v13, %s4208_s22 }
 0x24f   : > { %1035 = vrot.lane.b32.xlu1 %v4330_v11, %s4208_s22 }
 0x253   : > { %1111 = vrot.lane.b32.xlu1 %v4336_v16, %s4208_s22 }
 0x257   : > { %1271 = vrot.lane.b32.xlu1 %v4338_v17, %s4209_s23 }
 0x258   : > { %959 = vrot.lane.b32.xlu0 %v4338_v17, %s4208_s22 }
 0x25c   : > { %1193 = vrot.lane.b32.xlu0 %v4332_v13, %s4209_s23 }
 0x2c3   : > { %v841_v34 = vpop.xlane.xlu0 %840 }
 0x2c4   : > { %v851_v35 = vsub.f32 %v604_v22, %v841_v34 }
 0x2c6   : > { %v855_v36 = vmul.f32 1.442695, %v851_v35 }
 0x2c7   : > { %v844_v37 = vpop.xlane.xlu1 %843 }
 0x2c8   : > { %4113 = vpow2.f32 %v855_v36  ;;  %v852_v38 = vsub.f32 %v681_v25, %v844_v37 }
 0x2ca   : > { %v857_v39 = vmul.f32 1.442695, %v852_v38 }
 0x2cb   : > { %v884_v40 = vpop.permute.xlu1 %883  ;;  %v847_v41 = vpop.xlane.xlu0 %846 }
 0x2cc   : > { %4115 = vpow2.f32 %v857_v39  ;;  %3912 = vmatpush3.msra.mxu1 %v884_v40  ;;  %v853_v52 = vsub.f32 %v758_v30, %v847_v41 }
 0x2cd   : > { %3921 = vmatprep.subr.mxu1 %v4205_v8 }
 0x2ce   : > { %v859_v53 = vmul.f32 1.442695, %v853_v52 }
 0x2cf   : > { %v850_v42 = vpop.xlane.xlu0 %849  ;;  %v1036_v56 = vpop.permute.xlu1 %1035 }
 0x2d0   : > { %v854_v43 = vsub.f32 %v835_v26, %v850_v42 }
 0x2d2   : > { %v4114_v44 = vpop.eup %4113  ;;  %v861_v45 = vmul.f32 1.442695, %v854_v43 }
 0x2d3   : > { %v960_v46 = vpop.permute.xlu0 %959  ;;  %v863_v47 = vsel %vm533_vm2, %v4114_v44, 0.0  ;;  %v1112_v57 = vpop.permute.xlu1 %1111 }
 0x2d4   : > { %4117 = vpow2.f32 %v861_v45  ;;  %864 = vadd.xlane.f32.xlu1 %v863_v47  ;;  %3917 = vmatpush3.msra.mxu0 %v960_v46 }
 0x2d5   : > { %3926 = vmatprep.subr.mxu0 %v4205_v8  ;;  %4119 = vpow2.f32 %v859_v53 }
 0x2d6   : > { %v4116_v48 = vpop.eup %4115 }
 0x2d7   : > { %v866_v49 = vsel %vm533_vm2, %v4116_v48, 0.0  ;;  %v1272_v58 = vpop.permute.xlu1 %1271  ;;  %v1194_v59 = vpop.permute.xlu0 %1193 }
 0x2d8   : > { %867 = vadd.xlane.f32.xlu0 %v866_v49 }
 0x2de   : > { %v4118_v50 = vpop.eup %4117 }
 0x2df   : > { %v872_v51 = vsel %vm533_vm2, %v4118_v50, 0.0  ;;  %v4120_v54 = vpop.eup %4119 }
 0x2e0   : > { %873 = vadd.xlane.f32.xlu0 %v872_v51  ;;  %v869_v55 = vsel %vm533_vm2, %v4120_v54, 0.0 }
 0x2e5   : > { %1269 = vrot.lane.b32.xlu1 %v4338_v17, %s4210_s24 }
 0x2f6   : > { %1191 = vrot.lane.b32.xlu0 %v4332_v13, %s4210_s24 }
 0x2fa   : > { %1349 = vrot.lane.b32.xlu0 %v4330_v11, %s4209_s23 }
 0x2fe   : > { %1347 = vrot.lane.b32.xlu0 %v4330_v11, %s4210_s24 }
 0x309   : > { %870 = vadd.xlane.f32.xlu1 %v869_v55 }
 0x31a   : > { %1427 = vrot.lane.b32.xlu1 %v4336_v16, %s4209_s23 }
 0x31e   : > { %1425 = vrot.lane.b32.xlu1 %v4336_v16, %s4210_s24 }
 0x361   : > { %v865_v60 = vpop.xlane.xlu1 %864 }
 0x362   : > { %4121 = vrcp.f32 %v865_v60 }
 0x365   : > { %v868_v61 = vpop.xlane.xlu0 %867  ;;  %v1270_v5 = vpop.permute.xlu1 %1269 }
 0x366   : > { %4123 = vrcp.f32 %v868_v61 }
 0x36c   : > { %v4122_v62 = vpop.eup %4121 }
 0x36d   : > { %v879_v63 = vmul.f32 %v4122_v62, %v4114_v44  ;;  %v874_v0 = vpop.xlane.xlu0 %873 }
 0x36e   : > { %4125 = vrcp.f32 %v874_v0 }
 0x36f   : > { %3914 = vmatmul.mubr.msk.f32.vlgmr.msra.gmra.mrb[4].mxu1 %vm533_vm2, %v879_v63 }
 0x370   : > { %v4124_v1 = vpop.eup %4123  ;;  %3922 = vmatpush3.msra.mxu1 %v1036_v56  ;;  %3923 = vmatprep.mubr.msk.f32.mxu1 %vm4206_vm1, %v4205_v8 }
 0x371   : > { %v880_v2 = vmul.f32 %v4124_v1, %v4116_v48  ;;  %3931 = vmatprep.subr.mxu1 %v4205_v8  ;;  %v1192_v10 = vpop.permute.xlu0 %1191 }
 0x373   : > { %3919 = vmatmul.mubr.msk.f32.vlgmr.msra.gmra.mrb[8].mxu0 %vm533_vm2, %v880_v2 }
 0x374   : > { %3927 = vmatpush3.msra.mxu0 %v1112_v57  ;;  %3928 = vmatprep.mubr.msk.f32.mxu0 %vm4206_vm1, %v4205_v8 }
 0x375   : > { %3936 = vmatprep.subr.mxu0 %v4205_v8  ;;  %v1350_v15 = vpop.permute.xlu0 %1349 }
 0x378   : > { %v4126_v3 = vpop.eup %4125 }
 0x379   : > { %v882_v4 = vmul.f32 %v4126_v3, %v4118_v50  ;;  %v1348_v18 = vpop.permute.xlu0 %1347 }
 0x37b   : > { %3929 = vmatmul.mubr.msk.f32.vlgmr.msra.gmra.mrb[10].mxu0 %vm533_vm2, %v882_v4 }
 0x37c   : > { %3937 = vmatpush3.xpose.msk.msra.mxu0 %vm533_vm2, %v1272_v58  ;;  %3938 = vmatprep.mubr.msk.f32.mxu0 %vm4206_vm1, %v4205_v8 }
 0x37d   : > { %3946 = vmatprep.subr.mxu0 %v4205_v8 }
 0x37f   : > { %3939 = vmatmul.mubr.msk.f32.vlgmr.msra.gmra.mrb[12].mxu0 %vm533_vm2, %v1270_v5 }
 0x380   : > { %3948 = vmatprep.mubr.msk.f32.mxu0 %vm4206_vm1, %v4205_v8 }
 0x396   : > { %v871_v6 = vpop.xlane.xlu1 %870 }
 0x397   : > { %4127 = vrcp.f32 %v871_v6 }
 0x39a   : > { %v1428_v7 = vpop.permute.xlu1 %1427 }
 0x39b   : > { %3947 = vmatpush3.xpose.msk.msra.mxu0 %vm533_vm2, %v1428_v7 }
 0x39c   : > { %3956 = vmatprep.subr.mxu0 %v4205_v8 }
 0x39e   : > { %v1426_v9 = vpop.permute.xlu1 %1425 }
 0x39f   : > { %3949 = vmatmul.mubr.msk.f32.vlgmr.msra.gmra.mrb[14].mxu0 %vm533_vm2, %v1426_v9 }
 0x3a0   : > { %3958 = vmatprep.mubr.msk.f32.mxu0 %vm4206_vm1, %v4205_v8 }
 0x3a1   : > { %v4128_v12 = vpop.eup %4127 }
 0x3a2   : > { %v881_v14 = vmul.f32 %v4128_v12, %v4120_v54 }
 0x3a4   : > { %3924 = vmatmul.mubr.msk.f32.vlgmr.msra.gmra.mrb[6].mxu1 %vm533_vm2, %v881_v14 }
 0x3a5   : > { %3932 = vmatpush3.xpose.msk.msra.mxu1 %vm533_vm2, %v1194_v59  ;;  %3933 = vmatprep.mubr.msk.f32.mxu1 %vm4206_vm1, %v4205_v8 }
 0x3a6   : > { %3941 = vmatprep.subr.mxu1 %v4205_v8 }
 0x3a8   : > { %3934 = vmatmul.mubr.msk.f32.vlgmr.msra.gmra.mrb[8].mxu1 %vm533_vm2, %v1192_v10 }
 0x3a9   : > { %3942 = vmatpush3.xpose.msk.msra.mxu1 %vm533_vm2, %v1350_v15  ;;  %3943 = vmatprep.mubr.msk.f32.mxu1 %vm4206_vm1, %v4205_v8 }
 0x3aa   : > { %3951 = vmatprep.subr.mxu1 %v4205_v8 }
 0x3ac   : > { %3944 = vmatmul.mubr.msk.f32.vlgmr.msra.gmra.mrb[10].mxu1 %vm533_vm2, %v1348_v18 }
 0x3ad   : > { %3953 = vmatprep.mubr.msk.f32.mxu1 %vm4206_vm1, %v4205_v8 }
 0x442   : > { %v955_v19 = vpop.f32.mrb[4].mxu1 }
 0x443   : > { %1187 = vst.msk [vmem:[#allocation2] sm:$0xff] %vm533_vm2, %v955_v19  ;;  %v3915_v20 = vpop.f32.mrb[5].mxu1 }
 0x446   : > { %v1031_v21 = vpop.f32.mrb[8].mxu0 }
 0x447   : > { %1188 = vst.msk [vmem:[#allocation2 + $0x8] sm:$0xff] %vm533_vm2, %v1031_v21  ;;  %v3920_v22 = vpop.f32.mrb[9].mxu0 }
 0x44e   : > { %v1183_v23 = vpop.f32.mrb[10].mxu0 }
 0x44f   : > { %1190 = vst.msk [vmem:[#allocation2 + $0x18] sm:$0xff] %vm533_vm2, %v1183_v23  ;;  %v3930_v24 = vpop.f32.mrb[11].mxu0 }
 0x452   : > { %v1343_v25 = vpop.f32.mrb[12].mxu0 }
 0x453   : > { %v3940_v26 = vpop.f32.mrb[13].mxu0  ;;  %v1506_v27 = vsel %vm533_vm2, %v1343_v25, -inf }
 0x454   : > { %1507 = vmax.xlane.f32.xlu1 %v1506_v27 }
 0x465   : > { %1547 = vrot.lane.b32.xlu1 %v4332_v13, %s4211_s26 }
 0x469   : > { %1699 = vrot.lane.b32.xlu1 %v4330_v11, %s4211_s26 }
 0x46d   : > { %1775 = vrot.lane.b32.xlu1 %v4336_v16, %s4211_s26 }
 0x471   : > { %1952 = vrot.lane.b32.xlu1 %v4338_v17, %s4212_s27 }
 0x472   : > { %v1499_v28 = vpop.f32.mrb[14].mxu0 }
 0x473   : > { %v3950_v29 = vpop.f32.mrb[15].mxu0  ;;  %v1512_v38 = vsel %vm533_vm2, %v1499_v28, -inf }
 0x477   : > { %v1107_v30 = vpop.f32.mrb[6].mxu1 }
 0x478   : > { %1189 = vst.msk [vmem:[#allocation2 + $0x10] sm:$0xff] %vm533_vm2, %v1107_v30  ;;  %v3925_v31 = vpop.f32.mrb[7].mxu1 }
 0x47b   : > { %v1265_v32 = vpop.f32.mrb[8].mxu1 }
 0x47c   : > { %v3935_v33 = vpop.f32.mrb[9].mxu1  ;;  %v1503_v34 = vsel %vm533_vm2, %v1265_v32, -inf }
 0x47d   : > { %1504 = vmax.xlane.f32.xlu0 %v1503_v34 }
 0x47f   : > { %v1421_v35 = vpop.f32.mrb[10].mxu1 }
 0x480   : > { %v3945_v36 = vpop.f32.mrb[11].mxu1  ;;  %v1509_v37 = vsel %vm533_vm2, %v1421_v35, -inf }
 0x481   : > { %1510 = vmax.xlane.f32.xlu0 %v1509_v37 }
 0x485   : > { %1513 = vmax.xlane.f32.xlu0 %v1512_v38 }
 0x49b   : > { %1623 = vrot.lane.b32.xlu0 %v4338_v17, %s4211_s26  ;;  %s4220_s26 = smov 24  }
 0x49f   : > { %1874 = vrot.lane.b32.xlu0 %v4332_v13, %s4212_s27 }
 0x4e1   : > { %v1508_v39 = vpop.xlane.xlu1 %1507 }
 0x4e2   : > { %v1516_v40 = vsub.f32 %v1343_v25, %v1508_v39 }
 0x4e4   : > { %v1521_v41 = vmul.f32 1.442695, %v1516_v40 }
 0x4e5   : > { %v1548_v42 = vpop.permute.xlu1 %1547 }
 0x4e6   : > { %4129 = vpow2.f32 %v1521_v41  ;;  %3952 = vmatpush3.msra.mxu1 %v1548_v42 }
 0x4e7   : > { %3961 = vmatprep.subr.mxu1 %v4205_v8 }
 0x4e9   : > { %v1700_v63 = vpop.permute.xlu1 %1699 }
 0x4ed   : > { %v1776_v2 = vpop.permute.xlu1 %1775 }
 0x4f0   : > { %v4130_v43 = vpop.eup %4129 }
 0x4f1   : > { %v1530_v44 = vsel %vm533_vm2, %v4130_v43, 0.0  ;;  %v1953_v3 = vpop.permute.xlu1 %1952 }
 0x4f2   : > { %1531 = vadd.xlane.f32.xlu0 %v1530_v44 }
 0x50a   : > { %v1505_v45 = vpop.xlane.xlu0 %1504 }
 0x50b   : > { %v1515_v46 = vsub.f32 %v1265_v32, %v1505_v45 }
 0x50d   : > { %v1519_v47 = vmul.f32 1.442695, %v1515_v46 }
 0x50e   : > { %v1511_v48 = vpop.xlane.xlu0 %1510 }
 0x50f   : > { %4131 = vpow2.f32 %v1519_v47  ;;  %v1517_v49 = vsub.f32 %v1421_v35, %v1511_v48 }
 0x511   : > { %v1523_v50 = vmul.f32 1.442695, %v1517_v49 }
 0x512   : > { %v1514_v51 = vpop.xlane.xlu0 %1513 }
 0x513   : > { %4133 = vpow2.f32 %v1523_v50  ;;  %v1518_v52 = vsub.f32 %v1499_v28, %v1514_v51 }
 0x515   : > { %v1525_v53 = vmul.f32 1.442695, %v1518_v52 }
 0x516   : > { %v1624_v54 = vpop.permute.xlu0 %1623 }
 0x517   : > { %4135 = vpow2.f32 %v1525_v53  ;;  %3957 = vmatpush3.msra.mxu0 %v1624_v54 }
 0x518   : > { %3966 = vmatprep.subr.mxu0 %v4205_v8 }
 0x519   : > { %v4132_v55 = vpop.eup %4131 }
 0x51a   : > { %v1527_v56 = vsel %vm533_vm2, %v4132_v55, 0.0  ;;  %v1875_v61 = vpop.permute.xlu0 %1874 }
 0x51b   : > { %1528 = vadd.xlane.f32.xlu1 %v1527_v56 }
 0x51d   : > { %v4134_v57 = vpop.eup %4133 }
 0x51e   : > { %v1533_v58 = vsel %vm533_vm2, %v4134_v57, 0.0 }
 0x51f   : > { %1534 = vadd.xlane.f32.xlu1 %v1533_v58 }
 0x521   : > { %v4136_v59 = vpop.eup %4135 }
 0x522   : > { %v1536_v60 = vsel %vm533_vm2, %v4136_v59, 0.0 }
 0x523   : > { %1537 = vadd.xlane.f32.xlu0 %v1536_v60 }
 0x530   : > { %1950 = vrot.lane.b32.xlu1 %v4338_v17, %s4213_s28 }
 0x534   : > { %2108 = vrot.lane.b32.xlu1 %v4336_v16, %s4212_s27 }
 0x538   : > { %2106 = vrot.lane.b32.xlu1 %v4336_v16, %s4213_s28 }
 0x539   : > { %1872 = vrot.lane.b32.xlu0 %v4332_v13, %s4213_s28 }
 0x53c   : > { %2228 = vrot.lane.b32.xlu1 %v4332_v13, %s4214_s30 }
 0x53d   : > { %2030 = vrot.lane.b32.xlu0 %v4330_v11, %s4212_s27  ;;  %s442_s27 = scalar_lea.vmem %s4692_s13, %s3722_s15 }
 0x540   : > { %2380 = vrot.lane.b32.xlu1 %v4330_v11, %s4214_s30 }
 0x541   : > { %2028 = vrot.lane.b32.xlu0 %v4330_v11, %s4213_s28 }
 0x544   : > { %2456 = vrot.lane.b32.xlu1 %v4336_v16, %s4214_s30 }
 0x545   : > { %2304 = vrot.lane.b32.xlu0 %v4338_v17, %s4214_s30 }
 0x57f   : > { %v1532_v62 = vpop.xlane.xlu0 %1531 }
 0x580   : > { %4137 = vrcp.f32 %v1532_v62 }
 0x58a   : > { %v4138_v0 = vpop.eup %4137 }
 0x58b   : > { %v1544_v1 = vmul.f32 %v4138_v0, %v4130_v43 }
 0x58d   : > { %3959 = vmatmul.mubr.msk.f32.vlgmr.msra.gmra.mrb[16].mxu0 %vm533_vm2, %v1544_v1 }
 0x58e   : > { %3967 = vmatpush3.msra.mxu0 %v1776_v2  ;;  %3968 = vmatprep.mubr.msk.f32.mxu0 %vm4206_vm1, %v4205_v8 }
 0x58f   : > { %3976 = vmatprep.subr.mxu0 %v4205_v8 }
 0x5a8   : > { %v1529_v4 = vpop.xlane.xlu1 %1528 }
 0x5a9   : > { %4139 = vrcp.f32 %v1529_v4 }
 0x5ac   : > { %v1535_v5 = vpop.xlane.xlu1 %1534 }
 0x5ad   : > { %4141 = vrcp.f32 %v1535_v5 }
 0x5b0   : > { %v1538_v6 = vpop.xlane.xlu0 %1537  ;;  %v1951_v9 = vpop.permute.xlu1 %1950 }
 0x5b1   : > { %4143 = vrcp.f32 %v1538_v6 }
 0x5b3   : > { %v4140_v7 = vpop.eup %4139 }
 0x5b4   : > { %v1543_v10 = vmul.f32 %v4140_v7, %v4132_v55  ;;  %v1873_v12 = vpop.permute.xlu0 %1872  ;;  %v2109_v18 = vpop.permute.xlu1 %2108 }
 0x5b6   : > { %3954 = vmatmul.mubr.msk.f32.vlgmr.msra.gmra.mrb[12].mxu1 %vm533_vm2, %v1543_v10 }
 0x5b7   : > { %v4142_v14 = vpop.eup %4141  ;;  %3962 = vmatpush3.msra.mxu1 %v1700_v63  ;;  %3963 = vmatprep.mubr.msk.f32.mxu1 %vm4206_vm1, %v4205_v8 }
 0x5b8   : > { %v1545_v15 = vmul.f32 %v4142_v14, %v4134_v57  ;;  %3971 = vmatprep.subr.mxu1 %v4205_v8  ;;  %v2031_v19 = vpop.permute.xlu0 %2030  ;;  %v2107_v22 = vpop.permute.xlu1 %2106 }
 0x5ba   : > { %3964 = vmatmul.mubr.msk.f32.vlgmr.msra.gmra.mrb[14].mxu1 %vm533_vm2, %v1545_v15 }
 0x5bb   : > { %v4144_v20 = vpop.eup %4143  ;;  %3973 = vmatprep.mubr.msk.f32.mxu1 %vm4206_vm1, %v4205_v8 }
 0x5bc   : > { %v1546_v21 = vmul.f32 %v4144_v20, %v4136_v59  ;;  %v2029_v23 = vpop.permute.xlu0 %2028  ;;  %v2229_v24 = vpop.permute.xlu1 %2228 }
 0x5be   : > { %3972 = vmatpush3.xpose.msk.msra.mxu1 %vm533_vm2, %v1875_v61  ;;  %3969 = vmatmul.mubr.msk.f32.vlgmr.msra.gmra.mrb[18].mxu0 %vm533_vm2, %v1546_v21 }
 0x5bf   : > { %3977 = vmatpush3.xpose.msk.msra.mxu0 %vm533_vm2, %v1953_v3  ;;  %3981 = vmatprep.subr.mxu1 %v4205_v8 }
 0x5c0   : > { %3978 = vmatprep.mubr.msk.f32.mxu0 %vm4206_vm1, %v4205_v8  ;;  %3986 = vmatprep.subr.mxu0 %v4205_v8  ;;  %v2305_v25 = vpop.permute.xlu0 %2304  ;;  %v2381_v46 = vpop.permute.xlu1 %2380 }
 0x5c1   : > { %3974 = vmatmul.mubr.msk.f32.vlgmr.msra.gmra.mrb[16].mxu1 %vm533_vm2, %v1873_v12 }
 0x5c2   : > { %3982 = vmatpush3.xpose.msk.msra.mxu1 %vm533_vm2, %v2031_v19  ;;  %3979 = vmatmul.mubr.msk.f32.vlgmr.msra.gmra.mrb[20].mxu0 %vm533_vm2, %v1951_v9 }
 0x5c3   : > { %3987 = vmatpush3.xpose.msk.msra.mxu0 %vm533_vm2, %v2109_v18  ;;  %3983 = vmatprep.mubr.msk.f32.mxu1 %vm4206_vm1, %v4205_v8 }
 0x5c4   : > { %3991 = vmatprep.subr.mxu1 %v4205_v8  ;;  %3988 = vmatprep.mubr.msk.f32.mxu0 %vm4206_vm1, %v4205_v8  ;;  %v2457_v47 = vpop.permute.xlu1 %2456 }
 0x5c5   : > { %3984 = vmatmul.mubr.msk.f32.vlgmr.msra.gmra.mrb[18].mxu1 %vm533_vm2, %v2029_v23  ;;  %3996 = vmatprep.subr.mxu0 %v4205_v8 }
 0x5c6   : > { %3992 = vmatpush3.msra.mxu1 %v2229_v24  ;;  %3989 = vmatmul.mubr.msk.f32.vlgmr.msra.gmra.mrb[22].mxu0 %vm533_vm2, %v2107_v22 }
 0x5c7   : > { %3997 = vmatpush3.msra.mxu0 %v2305_v25  ;;  %3993 = vmatprep.mubr.msk.f32.mxu1 %vm4206_vm1, %v4205_v8 }
 0x5c8   : > { %4001 = vmatprep.subr.mxu1 %v4205_v8  ;;  %3998 = vmatprep.mubr.msk.f32.mxu0 %vm4206_vm1, %v4205_v8 }
 0x5c9   : > { %4006 = vmatprep.subr.mxu0 %v4205_v8 }
 0x660   : > { %v4496_v26 = vpop.f32.mrb[16].mxu0 }
 0x661   : > { %v3960_v27 = vpop.f32.mrb[17].mxu0 }
 0x689   : > { %v4498_v28 = vpop.f32.mrb[12].mxu1 }
 0x68a   : > { %v3955_v29 = vpop.f32.mrb[13].mxu1 }
 0x68d   : > { %v4500_v30 = vpop.f32.mrb[14].mxu1 }
 0x68e   : > { %v3965_v31 = vpop.f32.mrb[15].mxu1 }
 0x691   : > { %v4502_v32 = vpop.f32.mrb[18].mxu0 }
 0x692   : > { %v3970_v33 = vpop.f32.mrb[19].mxu0 }
 0x694   : > { %v1946_v34 = vpop.f32.mrb[16].mxu1 }
 0x695   : > { %v3975_v35 = vpop.f32.mrb[17].mxu1  ;;  %v2024_v36 = vpop.f32.mrb[20].mxu0  ;;  %v2184_v37 = vsel %vm533_vm2, %v1946_v34, -inf }
 0x696   : > { %2185 = vmax.xlane.f32.xlu0 %v2184_v37  ;;  %v3980_v38 = vpop.f32.mrb[21].mxu0  ;;  %v2187_v39 = vsel %vm533_vm2, %v2024_v36, -inf }
 0x697   : > { %2188 = vmax.xlane.f32.xlu1 %v2187_v39 }
 0x698   : > { %v2102_v40 = vpop.f32.mrb[18].mxu1 }
 0x699   : > { %v3985_v41 = vpop.f32.mrb[19].mxu1  ;;  %v2180_v42 = vpop.f32.mrb[22].mxu0  ;;  %v2190_v43 = vsel %vm533_vm2, %v2102_v40, -inf }
 0x69a   : > { %2191 = vmax.xlane.f32.xlu0 %v2190_v43  ;;  %v3990_v44 = vpop.f32.mrb[23].mxu0  ;;  %v2193_v45 = vsel %vm533_vm2, %v2180_v42, -inf }
 0x69e   : > { %2194 = vmax.xlane.f32.xlu0 %v2193_v45 }
 0x6a8   : > { %2633 = vrot.lane.b32.xlu1 %v4338_v17, %s4215_s14 }
 0x6b4   : > { %2555 = vrot.lane.b32.xlu0 %v4332_v13, %s4215_s14 }
 0x723   : > { %v2186_v48 = vpop.xlane.xlu0 %2185 }
 0x724   : > { %v2196_v49 = vsub.f32 %v1946_v34, %v2186_v48  ;;  %v2189_v50 = vpop.xlane.xlu1 %2188 }
 0x725   : > { %v2197_v51 = vsub.f32 %v2024_v36, %v2189_v50 }
 0x726   : > { %v2200_v52 = vmul.f32 1.442695, %v2196_v49 }
 0x727   : > { %v2202_v53 = vmul.f32 1.442695, %v2197_v51  ;;  %v2192_v58 = vpop.xlane.xlu0 %2191 }
 0x728   : > { %4145 = vpow2.f32 %v2200_v52  ;;  %v2198_v60 = vsub.f32 %v2102_v40, %v2192_v58  ;;  %v2634_v4 = vpop.permute.xlu1 %2633 }
 0x729   : > { %4147 = vpow2.f32 %v2202_v53 }
 0x72a   : > { %v2204_v62 = vmul.f32 1.442695, %v2198_v60 }
 0x72b   : > { %v2195_v59 = vpop.xlane.xlu0 %2194 }
 0x72c   : > { %v2199_v61 = vsub.f32 %v2180_v42, %v2195_v59  ;;  %4149 = vpow2.f32 %v2204_v62 }
 0x72e   : > { %v2206_v63 = vmul.f32 1.442695, %v2199_v61 }
 0x72f   : > { %v2556_v5 = vpop.permute.xlu0 %2555 }
 0x730   : > { %4151 = vpow2.f32 %v2206_v63 }
 0x732   : > { %v4146_v54 = vpop.eup %4145 }
 0x733   : > { %v4148_v55 = vpop.eup %4147  ;;  %v2208_v56 = vsel %vm533_vm2, %v4146_v54, 0.0 }
 0x734   : > { %2209 = vadd.xlane.f32.xlu1 %v2208_v56  ;;  %v2211_v57 = vsel %vm533_vm2, %v4148_v55, 0.0 }
 0x735   : > { %2212 = vadd.xlane.f32.xlu0 %v2211_v57 }
 0x736   : > { %v4150_v0 = vpop.eup %4149 }
 0x737   : > { %v2214_v2 = vsel %vm533_vm2, %v4150_v0, 0.0 }
 0x73a   : > { %v4152_v1 = vpop.eup %4151 }
 0x73b   : > { %v2217_v3 = vsel %vm533_vm2, %v4152_v1, 0.0 }
 0x745   : > { %2631 = vrot.lane.b32.xlu1 %v4338_v17, %s4216_s16 }
 0x74b   : > { %2553 = vrot.lane.b32.xlu0 %v4332_v13, %s4216_s16 }
 0x769   : > { %2215 = vadd.xlane.f32.xlu1 %v2214_v2 }
 0x76a   : > { %2218 = vadd.xlane.f32.xlu0 %v2217_v3 }
 0x77a   : > { %2789 = vrot.lane.b32.xlu1 %v4336_v16, %s4215_s14 }
 0x77e   : > { %2787 = vrot.lane.b32.xlu1 %v4336_v16, %s4216_s16 }
 0x780   : > { %2711 = vrot.lane.b32.xlu0 %v4330_v11, %s4215_s14 }
 0x784   : > { %2709 = vrot.lane.b32.xlu0 %v4330_v11, %s4216_s16 }
 0x7c1   : > { %v2210_v6 = vpop.xlane.xlu1 %2209 }
 0x7c2   : > { %4153 = vrcp.f32 %v2210_v6  ;;  %v2213_v7 = vpop.xlane.xlu0 %2212 }
 0x7c3   : > { %4155 = vrcp.f32 %v2213_v7 }
 0x7c5   : > { %v2632_v15 = vpop.permute.xlu1 %2631 }
 0x7c6   : > { %v2554_v18 = vpop.permute.xlu0 %2553 }
 0x7cc   : > { %v4154_v9 = vpop.eup %4153 }
 0x7cd   : > { %v4156_v10 = vpop.eup %4155  ;;  %v2224_v12 = vmul.f32 %v4154_v9, %v4146_v54 }
 0x7ce   : > { %v2225_v14 = vmul.f32 %v4156_v10, %v4148_v55 }
 0x7cf   : > { %3994 = vmatmul.mubr.msk.f32.vlgmr.msra.gmra.mrb[20].mxu1 %vm533_vm2, %v2224_v12 }
 0x7d0   : > { %4002 = vmatpush3.msra.mxu1 %v2381_v46  ;;  %3999 = vmatmul.mubr.msk.f32.vlgmr.msra.gmra.mrb[24].mxu0 %vm533_vm2, %v2225_v14 }
 0x7d1   : > { %4007 = vmatpush3.msra.mxu0 %v2457_v47  ;;  %4003 = vmatprep.mubr.msk.f32.mxu1 %vm4206_vm1, %v4205_v8 }
 0x7d2   : > { %4011 = vmatprep.subr.mxu1 %v4205_v8  ;;  %4008 = vmatprep.mubr.msk.f32.mxu0 %vm4206_vm1, %v4205_v8 }
 0x7d3   : > { %4016 = vmatprep.subr.mxu0 %v4205_v8 }
 0x7f6   : > { %v2216_v19 = vpop.xlane.xlu1 %2215 }
 0x7f7   : > { %4157 = vrcp.f32 %v2216_v19  ;;  %v2219_v20 = vpop.xlane.xlu0 %2218 }
 0x7f8   : > { %4159 = vrcp.f32 %v2219_v20 }
 0x7fa   : > { %v2790_v27 = vpop.permute.xlu1 %2789 }
 0x7fb   : > { %v2712_v25 = vpop.permute.xlu0 %2711 }
 0x7fe   : > { %v2788_v31 = vpop.permute.xlu1 %2787 }
 0x7ff   : > { %v2710_v29 = vpop.permute.xlu0 %2709 }
 0x801   : > { %v4158_v21 = vpop.eup %4157 }
 0x802   : > { %v4160_v22 = vpop.eup %4159  ;;  %v2226_v23 = vmul.f32 %v4158_v21, %v4150_v0 }
 0x803   : > { %v2227_v24 = vmul.f32 %v4160_v22, %v4152_v1 }
 0x804   : > { %4004 = vmatmul.mubr.msk.f32.vlgmr.msra.gmra.mrb[22].mxu1 %vm533_vm2, %v2226_v23 }
 0x805   : > { %4012 = vmatpush3.xpose.msk.msra.mxu1 %vm533_vm2, %v2556_v5  ;;  %4009 = vmatmul.mubr.msk.f32.vlgmr.msra.gmra.mrb[26].mxu0 %vm533_vm2, %v2227_v24 }
 0x806   : > { %4017 = vmatpush3.xpose.msk.msra.mxu0 %vm533_vm2, %v2634_v4  ;;  %4013 = vmatprep.mubr.msk.f32.mxu1 %vm4206_vm1, %v4205_v8 }
 0x807   : > { %4021 = vmatprep.subr.mxu1 %v4205_v8  ;;  %4018 = vmatprep.mubr.msk.f32.mxu0 %vm4206_vm1, %v4205_v8 }
 0x808   : > { %4014 = vmatmul.mubr.msk.f32.vlgmr.msra.gmra.mrb[24].mxu1 %vm533_vm2, %v2554_v18  ;;  %4026 = vmatprep.subr.mxu0 %v4205_v8 }
 0x809   : > { %4022 = vmatpush3.xpose.msk.msra.mxu1 %vm533_vm2, %v2712_v25  ;;  %4019 = vmatmul.mubr.msk.f32.vlgmr.msra.gmra.mrb[28].mxu0 %vm533_vm2, %v2632_v15 }
 0x80a   : > { %4027 = vmatpush3.xpose.msk.msra.mxu0 %vm533_vm2, %v2790_v27  ;;  %4023 = vmatprep.mubr.msk.f32.mxu1 %vm4206_vm1, %v4205_v8 }
 0x80b   : > { %4028 = vmatprep.mubr.msk.f32.mxu0 %vm4206_vm1, %v4205_v8  ;;  %4031 = vmatprep.subr.mxu1 %v4205_v8 }
 0x80c   : > { %4024 = vmatmul.mubr.msk.f32.vlgmr.msra.gmra.mrb[26].mxu1 %vm533_vm2, %v2710_v29  ;;  %4036 = vmatprep.subr.mxu0 %v4205_v8 }
 0x80d   : > { %4029 = vmatmul.mubr.msk.f32.vlgmr.msra.gmra.mrb[30].mxu0 %vm533_vm2, %v2788_v31  ;;  %4033 = vmatprep.mubr.msk.f32.mxu1 %vm4206_vm1, %v4205_v8 }
 0x80e   : > { %4038 = vmatprep.mubr.msk.f32.mxu0 %vm4206_vm1, %v4205_v8 }
 0x8a2   : > { %v4558_v33 = vpop.f32.mrb[20].mxu1 }
 0x8a3   : > { %v3995_v34 = vpop.f32.mrb[21].mxu1  ;;  %v2376_v35 = vpop.f32.mrb[24].mxu0 }
 0x8a4   : > { %v4000_v36 = vpop.f32.mrb[25].mxu0  ;;  %v4106_v34 = vld [vmem:[%s4682_s3 + $0x8] sm:$0xff]  }
 0x8d7   : > { %v4560_v37 = vpop.f32.mrb[22].mxu1 }
 0x8d8   : > { %v4005_v38 = vpop.f32.mrb[23].mxu1  ;;  %v2528_v39 = vpop.f32.mrb[26].mxu0 }
 0x8d9   : > { %v4010_v40 = vpop.f32.mrb[27].mxu0 }
 0x8db   : > { %v2627_v41 = vpop.f32.mrb[24].mxu1 }
 0x8dc   : > { %v4015_v42 = vpop.f32.mrb[25].mxu1  ;;  %v2865_v43 = vsel %vm533_vm2, %v2627_v41, -inf  ;;  %v2705_v44 = vpop.f32.mrb[28].mxu0 }
 0x8dd   : > { %2866 = vmax.xlane.f32.xlu0 %v2865_v43  ;;  %v4020_v45 = vpop.f32.mrb[29].mxu0  ;;  %v2868_v46 = vsel %vm533_vm2, %v2705_v44, -inf }
 0x8de   : > { %2869 = vmax.xlane.f32.xlu1 %v2868_v46 }
 0x8df   : > { %v2783_v47 = vpop.f32.mrb[26].mxu1 }
 0x8e0   : > { %v4025_v48 = vpop.f32.mrb[27].mxu1  ;;  %v2861_v49 = vpop.f32.mrb[30].mxu0  ;;  %v2871_v50 = vsel %vm533_vm2, %v2783_v47, -inf }
 0x8e1   : > { %2872 = vmax.xlane.f32.xlu0 %v2871_v50  ;;  %v4030_v51 = vpop.f32.mrb[31].mxu0  ;;  %v2874_v52 = vsel %vm533_vm2, %v2861_v49, -inf }
 0x8e5   : > { %2875 = vmax.xlane.f32.xlu0 %v2874_v52 }
 0x8ef   : > { %2909 = vrot.lane.b32.xlu1 %v4332_v13, %s4217_s17 }
 0x96a   : > { %v2867_v53 = vpop.xlane.xlu0 %2866 }
 0x96b   : > { %v2877_v54 = vsub.f32 %v2627_v41, %v2867_v53  ;;  %v2870_v55 = vpop.xlane.xlu1 %2869  ;;  %v3778_v53 = vld [vmem:[%s4683_s4] ss:$0 sm:$0xff] }
 0x96c   : > { %v2878_v56 = vsub.f32 %v2705_v44, %v2870_v55 }
 0x96d   : > { %v2881_v57 = vmul.f32 1.442695, %v2877_v54 }
 0x96e   : > { %v2883_v58 = vmul.f32 1.442695, %v2878_v56  ;;  %v2873_v59 = vpop.xlane.xlu0 %2872 }
 0x96f   : > { %4161 = vpow2.f32 %v2881_v57  ;;  %v2879_v60 = vsub.f32 %v2783_v47, %v2873_v59  ;;  %v2910_v61 = vpop.permute.xlu1 %2909 }
 0x970   : > { %4163 = vpow2.f32 %v2883_v58  ;;  %4032 = vmatpush3.msra.mxu1 %v2910_v61  ;;  %v4193_v61 = vld [vmem:[%s4313_s18] sm:$0xff] }
 0x971   : > { %v2885_v62 = vmul.f32 1.442695, %v2879_v60  ;;  %4041 = vmatprep.subr.mxu1 %v4205_v8 }
 0x972   : > { %v2876_v63 = vpop.xlane.xlu0 %2875 }
 0x973   : > { %4165 = vpow2.f32 %v2885_v62  ;;  %v2880_v0 = vsub.f32 %v2861_v49, %v2876_v63 }
 0x975   : > { %v2887_v1 = vmul.f32 1.442695, %v2880_v0 }
 0x977   : > { %4167 = vpow2.f32 %v2887_v1  ;;  %v4194_v1 = vld [vmem:[%s4313_s18 + $0x8] sm:$0xff] }
 0x979   : > { %v4162_v13 = vpop.eup %4161 }
 0x97a   : > { %v4164_v2 = vpop.eup %4163  ;;  %v2889_v3 = vsel %vm533_vm2, %v4162_v13, 0.0 }
 0x97b   : > { %2890 = vadd.xlane.f32.xlu1 %v2889_v3  ;;  %v2892_v4 = vsel %vm533_vm2, %v4164_v2, 0.0 }
 0x97c   : > { %2893 = vadd.xlane.f32.xlu0 %v2892_v4 }
 0x97d   : > { %v4166_v5 = vpop.eup %4165 }
 0x97e   : > { %v2895_v6 = vsel %vm533_vm2, %v4166_v5, 0.0 }
 0x97f   : > { %2896 = vadd.xlane.f32.xlu1 %v2895_v6  ;;  %v4196_v6 = vld [vmem:[%s4313_s18 + $0x18] sm:$0xff] }
 0x981   : > { %v4168_v7 = vpop.eup %4167 }
 0x982   : > { %v2898_v9 = vsel %vm533_vm2, %v4168_v7, 0.0 }
 0x983   : > { %2899 = vadd.xlane.f32.xlu0 %v2898_v9 }
 0x990   : > { %3061 = vrot.lane.b32.xlu1 %v4330_v11, %s4217_s17 }
 0x994   : > { %3137 = vrot.lane.b32.xlu1 %v4336_v16, %s4217_s17 }
 0x998   : > { %1857 = vrot.lane.b32.xlu1 %v4496_v26, %s4218_s19 }
 0x999   : > { %2985 = vrot.lane.b32.xlu0 %v4338_v17, %s4217_s17 }
 0x99c   : > { %1861 = vrot.lane.b32.xlu1 %v4502_v32, %s4218_s19 }
 0x99d   : > { %1855 = vrot.lane.b32.xlu0 %v4498_v28, %s4218_s19 }
 0x9a0   : > { %2538 = vrot.lane.b32.xlu1 %v2376_v35, %s4219_s20 }
 0x9a1   : > { %1859 = vrot.lane.b32.xlu0 %v4500_v30, %s4218_s19 }
 0x9a4   : > { %2542 = vrot.lane.b32.xlu1 %v2528_v39, %s4219_s20 }
 0x9a5   : > { %2536 = vrot.lane.b32.xlu0 %v4558_v33, %s4219_s20 }
 0x9a9   : > { %2540 = vrot.lane.b32.xlu0 %v4560_v37, %s4219_s20 }
 0xa08   : > { %v2891_v11 = vpop.xlane.xlu1 %2890 }
 0xa09   : > { %4169 = vrcp.f32 %v2891_v11  ;;  %v2894_v16 = vpop.xlane.xlu0 %2893 }
 0xa0a   : > { %4171 = vrcp.f32 %v2894_v16 }
 0xa0c   : > { %v2897_v26 = vpop.xlane.xlu1 %2896 }
 0xa0d   : > { %4173 = vrcp.f32 %v2897_v26 }
 0xa10   : > { %v3062_v17 = vpop.permute.xlu1 %3061  ;;  %v2900_v10 = vpop.xlane.xlu0 %2899 }
 0xa11   : > { %4175 = vrcp.f32 %v2900_v10 }
 0xa13   : > { %v4170_v32 = vpop.eup %4169 }
 0xa14   : > { %v4172_v28 = vpop.eup %4171  ;;  %v2905_v12 = vmul.f32 %v4170_v32, %v4162_v13  ;;  %v3138_v14 = vpop.permute.xlu1 %3137 }
 0xa15   : > { %v2986_v15 = vpop.permute.xlu0 %2985  ;;  %v2906_v30 = vmul.f32 %v4172_v28, %v4164_v2  ;;  %v4195_v2 = vld [vmem:[%s4313_s18 + $0x10] sm:$0xff] }
 0xa16   : > { %4037 = vmatpush3.msra.mxu0 %v2986_v15  ;;  %4034 = vmatmul.mubr.msk.f32.vlgmr.msra.gmra.mrb[28].mxu1 %vm533_vm2, %v2905_v12 }
 0xa17   : > { %4046 = vmatprep.subr.mxu0 %v4205_v8  ;;  %v4174_v18 = vpop.eup %4173  ;;  %4042 = vmatpush3.msra.mxu1 %v3062_v17 }
 0xa18   : > { %4039 = vmatmul.mubr.msk.f32.vlgmr.msra.gmra.mrb[32].mxu0 %vm533_vm2, %v2906_v30  ;;  %v2907_v19 = vmul.f32 %v4174_v18, %v4166_v5  ;;  %v1858_v20 = vpop.permute.xlu1 %1857  ;;  %4043 = vmatprep.mubr.msk.f32.mxu1 %vm4206_vm1, %v4205_v8 }
 0xa19   : > { %4047 = vmatpush3.msra.mxu0 %v3138_v14  ;;  %v1856_v21 = vpop.permute.xlu0 %1855  ;;  %1869 = vst.msk [vmem:[#allocation2 + $0x8] sm:$0xff] %vm1867_vm3, %v1858_v20  ;;  %4048 = vmatprep.mubr.msk.f32.mxu0 %vm4206_vm1, %v4205_v8  ;;  %v4105_v8 = vld [vmem:[%s4682_s3] sm:$0xff]  }
 0xa1a   : > { %1868 = vst.msk [vmem:[#allocation2] sm:$0xff] %vm1867_vm3, %v1856_v21  ;;  %4044 = vmatmul.mubr.msk.f32.vlgmr.msra.gmra.mrb[30].mxu1 %vm533_vm2, %v2907_v19  ;;  %4051 = vmatprep.subr.bf16.mxu1 %v4105_v8 }
 0xa1b   : > { %v4176_v22 = vpop.eup %4175  ;;  %4052 = vmatpush3.bf16.msra.mxu1 %v4105_v8  ;;  %v4110_v8 = vld [vmem:[%s4686_s7 + $0x8] sm:$0xff]  }
 0xa1c   : > { %v2908_v23 = vmul.f32 %v4176_v22, %v4168_v7  ;;  %v1862_v24 = vpop.permute.xlu1 %1861  ;;  %4053 = vmatprep.subr.bf16.mxu1 %v4106_v34 }
 0xa1d   : > { %v1860_v25 = vpop.permute.xlu0 %1859  ;;  %1871 = vst.msk [vmem:[#allocation2 + $0x18] sm:$0xff] %vm1867_vm3, %v1862_v24 }
 0xa1e   : > { %1870 = vst.msk [vmem:[#allocation2 + $0x10] sm:$0xff] %vm1867_vm3, %v1860_v25  ;;  %4049 = vmatmul.mubr.msk.f32.vlgmr.msra.gmra.mrb[34].mxu0 %vm533_vm2, %v2908_v23 }
 0xa1f   : > { %4054 = vmatpush3.bf16.msra.mxu1 %v4106_v34 }
 0xa20   : > { %v2539_v27 = vpop.permute.xlu1 %2538 }
 0xa21   : > { %v2537_v29 = vpop.permute.xlu0 %2536  ;;  %2550 = vst.msk [vmem:[#allocation2 + $0x8] sm:$0xff] %vm2548_vm4, %v2539_v27 }
 0xa22   : > { %2549 = vst.msk [vmem:[#allocation2] sm:$0xff] %vm2548_vm4, %v2537_v29  ;;  %v4107_v29 = vld [vmem:[%s4684_s5] sm:$0xff]  }
 0xa23   : > { %4059 = vmatprep.subr.bf16.mxu0 %v4107_v29 }
 0xa24   : > { %v2543_v31 = vpop.permute.xlu1 %2542  ;;  %4060 = vmatpush3.bf16.msra.mxu0 %v4107_v29 }
 0xa25   : > { %v2541_v33 = vpop.permute.xlu0 %2540  ;;  %2552 = vst.msk [vmem:[#allocation2 + $0x18] sm:$0xff] %vm2548_vm4, %v2543_v31  ;;  %v4108_v31 = vld [vmem:[%s4684_s5 + $0x8] sm:$0xff]  }
 0xa26   : > { %2551 = vst.msk [vmem:[#allocation2 + $0x10] sm:$0xff] %vm2548_vm4, %v2541_v33  ;;  %4061 = vmatprep.subr.bf16.mxu0 %v4108_v31  ;;  %v4109_v33 = vld [vmem:[%s4686_s7] sm:$0xff]  }
 0xa27   : > { %4067 = vmatprep.subr.bf16.mxu1 %v4109_v33 }
 0xa28   : > { %4062 = vmatpush3.bf16.msra.mxu0 %v4108_v31 }
 0xae9   : > { %v2981_v35 = vpop.f32.mrb[28].mxu1 }
 0xaea   : > { %v4035_v36 = vpop.f32.mrb[29].mxu1  ;;  %3217 = vrot.lane.b32.xlu0 %v2981_v35, %s4220_s26 }
 0xaeb   : > { %v3057_v37 = vpop.f32.mrb[32].mxu0 }
 0xaec   : > { %3219 = vrot.lane.b32.xlu1 %v3057_v37, %s4220_s26  ;;  %v4040_v38 = vpop.f32.mrb[33].mxu0 }
 0xaed   : > { %v3133_v39 = vpop.f32.mrb[30].mxu1 }
 0xaee   : > { %v4045_v40 = vpop.f32.mrb[31].mxu1  ;;  %3221 = vrot.lane.b32.xlu0 %v3133_v39, %s4220_s26 }
 0xaf1   : > { %v3209_v41 = vpop.f32.mrb[34].mxu0 }
 0xaf2   : > { %3223 = vrot.lane.b32.xlu1 %v3209_v41, %s4220_s26  ;;  %v4050_v42 = vpop.f32.mrb[35].mxu0 }
 0xb5c   : > { %v3218_v43 = vpop.permute.xlu0 %3217 }
 0xb5d   : > { %3230 = vst.msk [vmem:[#allocation2] sm:$0xff] %vm3229_vm5, %v3218_v43 }
 0xb5e   : > { %v3220_v44 = vpop.permute.xlu1 %3219 }
 0xb5f   : > { %3231 = vst.msk [vmem:[#allocation2 + $0x8] sm:$0xff] %vm3229_vm5, %v3220_v44 }
 0xb60   : > { %v3222_v45 = vpop.permute.xlu0 %3221 }
 0xb61   : > { %3232 = vst.msk [vmem:[#allocation2 + $0x10] sm:$0xff] %vm3229_vm5, %v3222_v45 }
 0xb64   : > { %v3224_v46 = vpop.permute.xlu1 %3223  ;;  %v3234_v47 = vld [vmem:[#allocation2] sm:$0xff] }
 0xb65   : > { %3233 = vst.msk [vmem:[#allocation2 + $0x18] sm:$0xff] %vm3229_vm5, %v3224_v46 }
 0xb66   : > { %v3235_v48 = vld [vmem:[#allocation2 + $0x8] sm:$0xff] }
 0xb67   : > { %v3238_v49 = vpack.c.bf16 %v3235_v48, %v3234_v47  ;;  %v3783_v47 = vld [vmem:[%s4688_s9] ss:$0 sm:$0xff] }
 0xb68   : > { %v3236_v50 = vld [vmem:[#allocation2 + $0x10] sm:$0xff] }
 0xb69   : > { %4055 = vmatprep.mubr.msk.bf16.mxu1 %vm474_vm0, %v3238_v49 }
 0xb6c   : > { %v3237_v51 = vld [vmem:[#allocation2 + $0x18] sm:$0xff] }
 0xb6d   : > { %v3239_v52 = vpack.c.bf16 %v3237_v51, %v3236_v50 }
 0xb6f   : > { %4056 = vmatmul.mubr.msk.bf16.vlgmr.msra.gmra.mrb[32].mxu1 %vm474_vm0, %v3239_v52 }
 0xb70   : > { %4068 = vmatpush3.bf16.msra.mxu1 %v4109_v33 }
 0xb71   : > { %4069 = vmatprep.subr.bf16.mxu1 %v4110_v8 }
 0xb74   : > { %4070 = vmatpush3.bf16.msra.mxu1 %v4110_v8 }
 0xc42   : > { %v4057_v54 = vpop.f32.mrb[32].mxu1 }
 0xc43   : > { %v3303_v55 = vpop.f32.mrb[33].mxu1  ;;  %v3312_v56 = vadd.f32 %v4057_v54, %v3778_v53 }
 0xc44   : > { %v3304_v57 = vadd.f32 %v3778_v53, %v3303_v55  ;;  %v4058_v58 = vpop.f32.mrb[34].mxu1 }
 0xc45   : > { %v3306_v59 = vpop.f32.mrb[35].mxu1  ;;  %v3315_v63 = vadd.f32 %v4058_v58, %v3778_v53  ;;  %v3320_v3 = vadd.f32 %v4195_v2, %v3312_v56  ;;  %v4112_v2 = vld [vmem:[%s4686_s7 + $0x18] sm:$0xff]  }
 0xc46   : > { %v3307_v60 = vadd.f32 %v3778_v53, %v3306_v59  ;;  %v3318_v62 = vadd.f32 %v4193_v61, %v3304_v57  ;;  %v3784_v53 = vld [vmem:[%s4689_s10] ss:$0 sm:$0xff] }
 0xc47   : > { %v3330_v5 = vsel %vm474_vm0, %v3320_v3, 0.0  ;;  %v3321_v7 = vadd.f32 %v4196_v6, %v3315_v63 }
 0xc48   : > { %v3324_v0 = vsel %vm474_vm0, %v3318_v62, 0.0  ;;  %v3319_v13 = vadd.f32 %v4194_v1, %v3307_v60 }
 0xc49   : > { %3325 = vadd.xlane.f32.xlu0 %v3324_v0  ;;  %v3333_v9 = vsel %vm474_vm0, %v3321_v7, 0.0 }
 0xc4a   : > { %v3327_v4 = vsel %vm474_vm0, %v3319_v13, 0.0 }
 0xc4b   : > { %3328 = vadd.xlane.f32.xlu1 %v3327_v4 }
 0xc4d   : > { %3331 = vadd.xlane.f32.xlu0 %v3330_v5 }
 0xc51   : > { %3334 = vadd.xlane.f32.xlu0 %v3333_v9 }
 0xcd6   : > { %v3326_v11 = vpop.xlane.xlu0 %3325 }
 0xcd7   : > { %v3337_v16 = vmul.f32 0.03125, %v3326_v11 }
 0xcd8   : > { %v3329_v26 = vpop.xlane.xlu1 %3328 }
 0xcd9   : > { %v3341_v17 = vsub.f32 %v3318_v62, %v3337_v16  ;;  %v3338_v10 = vmul.f32 0.03125, %v3329_v26 }
 0xcda   : > { %v3332_v32 = vpop.xlane.xlu0 %3331 }
 0xcdb   : > { %v3342_v28 = vsub.f32 %v3319_v13, %v3338_v10  ;;  %v3339_v12 = vmul.f32 0.03125, %v3332_v32  ;;  %v3345_v14 = vmul.f32 %v3341_v17, %v3341_v17  ;;  %v4111_v13 = vld [vmem:[%s4686_s7 + $0x10] sm:$0xff]  }
 0xcdc   : > { %4071 = vmatprep.subr.bf16.mxu1 %v4111_v13 }
 0xcdd   : > { %v3343_v15 = vsub.f32 %v3320_v3, %v3339_v12  ;;  %v3349_v30 = vsel %vm474_vm0, %v3345_v14, 0.0  ;;  %v3346_v18 = vmul.f32 %v3342_v28, %v3342_v28  ;;  %4072 = vmatpush3.bf16.msra.mxu1 %v4111_v13  ;;  %v3785_v3 = vld [vmem:[%s4685_s6] ss:$0 sm:$0xff] }
 0xcde   : > { %3350 = vadd.xlane.f32.xlu1 %v3349_v30  ;;  %v3335_v19 = vpop.xlane.xlu0 %3334  ;;  %4073 = vmatprep.subr.bf16.mxu1 %v4112_v2 }
 0xcdf   : > { %v3340_v20 = vmul.f32 0.03125, %v3335_v19  ;;  %v3352_v21 = vsel %vm474_vm0, %v3346_v18, 0.0  ;;  %v3347_v22 = vmul.f32 %v3343_v15, %v3343_v15 }
 0xce0   : > { %3353 = vadd.xlane.f32.xlu0 %v3352_v21 }
 0xce1   : > { %v3344_v23 = vsub.f32 %v3321_v7, %v3340_v20  ;;  %v3355_v24 = vsel %vm474_vm0, %v3347_v22, 0.0  ;;  %4074 = vmatpush3.bf16.msra.mxu1 %v4112_v2 }
 0xce2   : > { %3356 = vadd.xlane.f32.xlu1 %v3355_v24 }
 0xce3   : > { %v3348_v25 = vmul.f32 %v3344_v23, %v3344_v23 }
 0xce5   : > { %v3358_v27 = vsel %vm474_vm0, %v3348_v25, 0.0 }
 0xce6   : > { %3359 = vadd.xlane.f32.xlu0 %v3358_v27 }
 0xd6b   : > { %v3351_v34 = vpop.xlane.xlu1 %3350 }
 0xd6c   : > { %v3361_v35 = vmul.f32 0.03125, %v3351_v34 }
 0xd6d   : > { %v3354_v36 = vpop.xlane.xlu0 %3353 }
 0xd6e   : > { %v3365_v37 = vadd.f32 1e-05, %v3361_v35  ;;  %v3362_v38 = vmul.f32 0.03125, %v3354_v36 }
 0xd6f   : > { %v3357_v39 = vpop.xlane.xlu1 %3356 }
 0xd70   : > { %4177 = vrsqrt.f32 %v3365_v37  ;;  %v3366_v40 = vadd.f32 1e-05, %v3362_v38  ;;  %v3363_v41 = vmul.f32 0.03125, %v3357_v39 }
 0xd72   : > { %4179 = vrsqrt.f32 %v3366_v40  ;;  %v3367_v42 = vadd.f32 1e-05, %v3363_v41 }
 0xd73   : > { %v3360_v43 = vpop.xlane.xlu0 %3359 }
 0xd74   : > { %4181 = vrsqrt.f32 %v3367_v42  ;;  %v3364_v44 = vmul.f32 0.03125, %v3360_v43 }
 0xd76   : > { %v3368_v45 = vadd.f32 1e-05, %v3364_v44 }
 0xd78   : > { %4183 = vrsqrt.f32 %v3368_v45 }
 0xd7a   : > { %v4178_v46 = vpop.eup %4177 }
 0xd7b   : > { %v3373_v48 = vmul.f32 %v4178_v46, %v3341_v17 }
 0xd7c   : > { %v4180_v49 = vpop.eup %4179 }
 0xd7d   : > { %v3374_v50 = vmul.f32 %v4180_v49, %v3342_v28  ;;  %v3383_v51 = vmul.f32 %v3783_v47, %v3373_v48 }
 0xd7e   : > { %v4182_v52 = vpop.eup %4181 }
 0xd7f   : > { %v3375_v54 = vmul.f32 %v4182_v52, %v3343_v15  ;;  %v3384_v55 = vmul.f32 %v3783_v47, %v3374_v50  ;;  %v3393_v56 = vadd.f32 %v3784_v53, %v3383_v51  ;;  %v3790_v15 = vld [vmem:[%s4687_s8] ss:$0 sm:$0xff] }
 0xd81   : > { %v3394_v57 = vadd.f32 %v3784_v53, %v3384_v55  ;;  %v3385_v59 = vmul.f32 %v3783_v47, %v3375_v54 }
 0xd82   : > { %v4184_v58 = vpop.eup %4183 }
 0xd83   : > { %v3376_v60 = vmul.f32 %v4184_v58, %v3344_v23  ;;  %v3397_v61 = vpack.c.bf16 %v3394_v57, %v3393_v56  ;;  %v3395_v63 = vadd.f32 %v3784_v53, %v3385_v59 }
 0xd85   : > { %v3386_v62 = vmul.f32 %v3783_v47, %v3376_v60  ;;  %4063 = vmatprep.mubr.msk.bf16.mxu0 %vm474_vm0, %v3397_v61 }
 0xd87   : > { %v3396_v0 = vadd.f32 %v3784_v53, %v3386_v62 }
 0xd89   : > { %v3398_v1 = vpack.c.bf16 %v3396_v0, %v3395_v63 }
 0xd8b   : > { %4064 = vmatmul.mubr.msk.bf16.vlgmr.msra.gmra.mrb[36].mxu0 %vm474_vm0, %v3398_v1 }
 0xe5e   : > { %v4065_v4 = vpop.f32.mrb[36].mxu0 }
 0xe5f   : > { %v3471_v5 = vadd.f32 %v4065_v4, %v3785_v3  ;;  %v3462_v6 = vpop.f32.mrb[37].mxu0  ;;  %v3797_v4 = vld [vmem:[%s4690_s11] ss:$0 sm:$0xff] }
 0xe60   : > { %v3463_v7 = vadd.f32 %v3785_v3, %v3462_v6  ;;  %v4066_v9 = vpop.f32.mrb[38].mxu0 }
 0xe61   : > { %v3474_v11 = vadd.f32 %v4066_v9, %v3785_v3  ;;  %v3465_v16 = vpop.f32.mrb[39].mxu0  ;;  %v3479_v17 = vmax.f32 %v3471_v5, 0.0 }
 0xe62   : > { %v3466_v26 = vadd.f32 %v3785_v3, %v3465_v16  ;;  %v3477_v32 = vmax.f32 %v3463_v7, 0.0  ;;  %v3798_v7 = vld [vmem:[%s4691_s12] ss:$0 sm:$0xff] }
 0xe63   : > { %v3480_v10 = vmax.f32 %v3474_v11, 0.0 }
 0xe64   : > { %v3478_v28 = vmax.f32 %v3466_v26, 0.0 }
 0xe65   : > { %v3482_v12 = vpack.c.bf16 %v3480_v10, %v3479_v17 }
 0xe66   : > { %v3481_v14 = vpack.c.bf16 %v3478_v28, %v3477_v32 }
 0xe68   : > { %4075 = vmatprep.mubr.msk.bf16.mxu1 %vm3522_vm6, %v3481_v14 }
 0xe69   : > { %4076 = vmatmul.mubr.msk.bf16.vlgmr.msra.gmra.mrb[36].mxu1 %vm3522_vm6, %v3482_v12 }
 0xf3c   : > { %v4077_v30 = vpop.f32.mrb[36].mxu1 }
 0xf3d   : > { %v3563_v18 = vpop.f32.mrb[37].mxu1  ;;  %v3572_v19 = vadd.f32 %v4077_v30, %v3790_v15 }
 0xf3e   : > { %v3564_v20 = vadd.f32 %v3790_v15, %v3563_v18  ;;  %v4078_v21 = vpop.f32.mrb[38].mxu1 }
 0xf3f   : > { %v3566_v22 = vpop.f32.mrb[39].mxu1  ;;  %v3575_v23 = vadd.f32 %v4078_v21, %v3790_v15  ;;  %v3580_v31 = vadd.f32 %v3572_v19, %v3395_v63 }
 0xf40   : > { %v3567_v24 = vadd.f32 %v3790_v15, %v3566_v22  ;;  %v3578_v25 = vadd.f32 %v3564_v20, %v3393_v56 }
 0xf41   : > { %v3581_v33 = vadd.f32 %v3575_v23, %v3396_v0  ;;  %v3590_v34 = vsel %vm474_vm0, %v3580_v31, 0.0 }
 0xf42   : > { %v3579_v27 = vadd.f32 %v3567_v24, %v3394_v57  ;;  %v3584_v29 = vsel %vm474_vm0, %v3578_v25, 0.0 }
 0xf43   : > { %3585 = vadd.xlane.f32.xlu1 %v3584_v29  ;;  %v3593_v35 = vsel %vm474_vm0, %v3581_v33, 0.0 }
 0xf44   : > { %v3587_v8 = vsel %vm474_vm0, %v3579_v27, 0.0 }
 0xf45   : > { %3588 = vadd.xlane.f32.xlu0 %v3587_v8 }
 0xf47   : > { %3591 = vadd.xlane.f32.xlu1 %v3590_v34 }
 0xf49   : > { %3594 = vadd.xlane.f32.xlu0 %v3593_v35 }
 0xfd0   : > { %v3586_v36 = vpop.xlane.xlu1 %3585 }
 0xfd1   : > { %v3596_v37 = vmul.f32 0.03125, %v3586_v36 }
 0xfd2   : > { %v3589_v38 = vpop.xlane.xlu0 %3588 }
 0xfd3   : > { %v3600_v39 = vsub.f32 %v3578_v25, %v3596_v37  ;;  %v3597_v40 = vmul.f32 0.03125, %v3589_v38 }
 0xfd4   : > { %v3592_v41 = vpop.xlane.xlu1 %3591 }
 0xfd5   : > { %v3601_v42 = vsub.f32 %v3579_v27, %v3597_v40  ;;  %v3598_v43 = vmul.f32 0.03125, %v3592_v41  ;;  %v3604_v44 = vmul.f32 %v3600_v39, %v3600_v39 }
 0xfd6   : > { %v3595_v45 = vpop.xlane.xlu0 %3594 }
 0xfd7   : > { %v3602_v46 = vsub.f32 %v3580_v31, %v3598_v43  ;;  %v3599_v47 = vmul.f32 0.03125, %v3595_v45  ;;  %v3608_v48 = vsel %vm474_vm0, %v3604_v44, 0.0  ;;  %v3605_v49 = vmul.f32 %v3601_v42, %v3601_v42 }
 0xfd8   : > { %3609 = vadd.xlane.f32.xlu1 %v3608_v48 }
 0xfd9   : > { %v3603_v50 = vsub.f32 %v3581_v33, %v3599_v47  ;;  %v3611_v51 = vsel %vm474_vm0, %v3605_v49, 0.0  ;;  %v3606_v52 = vmul.f32 %v3602_v46, %v3602_v46 }
 0xfda   : > { %3612 = vadd.xlane.f32.xlu0 %v3611_v51 }
 0xfdb   : > { %v3614_v53 = vsel %vm474_vm0, %v3606_v52, 0.0  ;;  %v3607_v54 = vmul.f32 %v3603_v50, %v3603_v50 }
 0xfdc   : > { %3615 = vadd.xlane.f32.xlu1 %v3614_v53 }
 0xfdd   : > { %v3617_v55 = vsel %vm474_vm0, %v3607_v54, 0.0 }
 0xfde   : > { %3618 = vadd.xlane.f32.xlu0 %v3617_v55 }
0x1065   : > { %v3610_v56 = vpop.xlane.xlu1 %3609 }
0x1066   : > { %v3620_v57 = vmul.f32 0.03125, %v3610_v56 }
0x1067   : > { %v3613_v58 = vpop.xlane.xlu0 %3612 }
0x1068   : > { %v3624_v59 = vadd.f32 1e-05, %v3620_v57  ;;  %v3621_v60 = vmul.f32 0.03125, %v3613_v58 }
0x1069   : > { %v3616_v61 = vpop.xlane.xlu1 %3615 }
0x106a   : > { %4185 = vrsqrt.f32 %v3624_v59  ;;  %v3625_v62 = vadd.f32 1e-05, %v3621_v60  ;;  %v3622_v63 = vmul.f32 0.03125, %v3616_v61 }
0x106b   : > { %v3619_v0 = vpop.xlane.xlu0 %3618 }
0x106c   : > { %4187 = vrsqrt.f32 %v3625_v62  ;;  %v3626_v1 = vadd.f32 1e-05, %v3622_v63  ;;  %v3623_v13 = vmul.f32 0.03125, %v3619_v0 }
0x106e   : > { %4189 = vrsqrt.f32 %v3626_v1  ;;  %v3627_v2 = vadd.f32 1e-05, %v3623_v13 }
0x1070   : > { %4191 = vrsqrt.f32 %v3627_v2 }
0x1074   : > { %v4186_v3 = vpop.eup %4185 }
0x1075   : > { %v3632_v5 = vmul.f32 %v4186_v3, %v3600_v39 }
0x1076   : > { %v4188_v6 = vpop.eup %4187 }
0x1077   : > { %v3642_v9 = vmul.f32 %v3797_v4, %v3632_v5  ;;  %v3633_v11 = vmul.f32 %v4188_v6, %v3601_v42 }
0x1078   : > { %v4190_v16 = vpop.eup %4189 }
0x1079   : > { %v3652_v26 = vadd.f32 %v3798_v7, %v3642_v9  ;;  %v3643_v17 = vmul.f32 %v3797_v4, %v3633_v11  ;;  %v3634_v10 = vmul.f32 %v4190_v16, %v3602_v46 }
0x107a   : > { %v4192_v32 = vpop.eup %4191 }
0x107b   : > { %3656 = vst.msk [vmem:[%s442_s27] sm:$0xff] %vm474_vm0, %v3652_v26  ;;  %v3653_v28 = vadd.f32 %v3798_v7, %v3643_v17  ;;  %v3644_v12 = vmul.f32 %v3797_v4, %v3634_v10  ;;  %v3635_v14 = vmul.f32 %v4192_v32, %v3603_v50 }
0x107d   : > { %3657 = vst.msk [vmem:[%s442_s27 + $0x8] sm:$0xff] %vm474_vm0, %v3653_v28  ;;  %v3654_v15 = vadd.f32 %v3798_v7, %v3644_v12  ;;  %v3645_v30 = vmul.f32 %v3797_v4, %v3635_v14 }
0x107f   : > { %3658 = vst.msk [vmem:[%s442_s27 + $0x10] sm:$0xff] %vm474_vm0, %v3654_v15  ;;  %v3655_v18 = vadd.f32 %v3798_v7, %v3645_v30 }
0x1081   : > { %3659 = vst.msk [vmem:[%s442_s27 + $0x18] sm:$0xff] %vm474_vm0, %v3655_v18 }
0x1082 PF: > { %s23_s25 = sadd.s32 1, %s4203_s25  }
0x1083   : > { %p20_p4 = scmp.ge.s32.totalorder %s23_s25, 4  }
0x1085   :  { %22 = sbr.rel (!%p20_p4) target bundleno = 1 (0x1), region = 102 }

</bundles_post_ra>
